<compile_context>
chip_gen: v7x
topology: tpu7x:2x2x1
jax: 0.10.0
libtpu: 0.0.40
codegen_flags: <defaults>
</compile_context>

<pallas_src>
import functools

import jax
import jax.numpy as jnp
from jax.experimental import pallas as pl
from jax.experimental.pallas import tpu as pltpu

K = 5        # conv kernel size
PAD = 2      # padding=2 -> "same" length
LANE = 128   # TPU lane width


def _round_up(x, m):
    return ((x + m - 1) // m) * m


def _resblock_kernel(x_ref, w1_ref, b1_ref, w2_ref, b2_ref, o_ref,
                     *, tl, l_valid, compute_dtype):
    # Grid = (N, L-tiles).  x_ref holds the whole halo-padded f32 row for this n
    # (block index constant over j -> stays resident in VMEM across the L-tile
    # axis); o_ref is one lane-dense (1, C, tl) tile.
    j = pl.program_id(1)
    start = pl.multiple_of(j * tl, tl)           # lane-aligned window start

    w_in = tl + 4 * PAD                          # input window (conv-of-conv halo)
    w_mid = tl + 2 * PAD                         # conv1-output window
    c = x_ref.shape[1]

    # (C, tl + 4*PAD) f32 window of the pre-padded input (residual stays f32).
    xw = x_ref[0, :, pl.ds(start, w_in)]

    # relu(x); cast ONCE to the matmul-operand dtype before any shifted slices.
    h = jnp.maximum(xw, 0.0).astype(compute_dtype)

    # ---- conv1: K per-tap matmuls (C,C)@(C,w_mid) accumulated in f32 --------
    acc1 = jnp.zeros((c, w_mid), jnp.float32)
    for k in range(K):
        acc1 = acc1 + jnp.dot(w1_ref[k], h[:, k:k + w_mid],
                              preferred_element_type=jnp.float32)
    y1 = acc1 + b1_ref[...]                      # (C, w_mid) f32

    # conv2's zero padding is relative to the *true* length L; the wrapper
    # padded L up to a lane multiple, so mask relu(y1) outside [0, L).
    # (1, w_mid) iota broadcast against (C, w_mid): one compare + one select.
    g = jax.lax.broadcasted_iota(jnp.int32, (1, w_mid), 1) + (j * tl - PAD)
    h2 = jnp.where((g >= 0) & (g < l_valid), jnp.maximum(y1, 0.0), 0.0)
    h2 = h2.astype(compute_dtype)                # cast once, before slices

    # ---- conv2: K per-tap matmuls (C,C)@(C,tl) accumulated in f32 -----------
    acc2 = jnp.zeros((c, tl), jnp.float32)
    for k in range(K):
        acc2 = acc2 + jnp.dot(w2_ref[k], h2[:, k:k + tl],
                              preferred_element_type=jnp.float32)
    y2 = acc2 + b2_ref[...]                      # (C, tl) f32

    x_center = xw[:, 2 * PAD:2 * PAD + tl]       # exact f32 residual slice
    o_ref[0] = (x_center + 0.3 * y2).astype(o_ref.dtype)


def resblock_forward(x_ncl, w1, b1, w2, b2, *,
                     compute_dtype=jnp.bfloat16, out_dtype=jnp.float32):
    """ResBlock forward.  x_ncl: (N, C, L) like PyTorch; w: (Cout, Cin, K); b: (C,)."""
    N, C, L = x_ncl.shape
    assert w1.shape == (C, C, K) and w2.shape == (C, C, K), "ResBlock needs Cout == Cin"
    assert b1.shape == (C,) and b2.shape == (C,)

    # Lane-dense output tiles that never fall back to 128-wide tiles.
    tl = 1024 if L >= 8192 else 512
    lp = _round_up(max(L, 1), tl)
    n_l_tiles = lp // tl

    # Pre-pad in the wrapper (HBM): 2*PAD halo left, (lp - L) + 2*PAD right, so
    # the kernel never zero-pads.  Keep x in f32 so the residual path is exact.
    x_pad = jnp.pad(x_ncl.astype(jnp.float32),
                    ((0, 0), (0, 0), (2 * PAD, (lp - L) + 2 * PAD)))

    # Per-tap weights: (Cout, Cin, K) -> (K, Cout, Cin) so each tap is one
    # (C, C) @ (C, w) MXU matmul accumulated in f32 (no im2col temporary).
    w1s = jnp.transpose(w1, (2, 0, 1)).astype(compute_dtype)
    w2s = jnp.transpose(w2, (2, 0, 1)).astype(compute_dtype)
    b1r = b1.reshape(C, 1).astype(jnp.float32)
    b2r = b2.reshape(C, 1).astype(jnp.float32)

    kernel = functools.partial(_resblock_kernel, tl=tl, l_valid=L,
                               compute_dtype=compute_dtype)

    cdt = jnp.dtype(compute_dtype).itemsize
    odt = jnp.dtype(out_dtype).itemsize
    flops = 2 * 2 * N * lp * C * (K * C)                       # two convs
    bytes_accessed = (x_pad.size * 4 + N * C * lp * odt
                      + 2 * (K * C * C * cdt + C * 4))

    # VMEM budget: derive from the chip (v7x has only 64 MiB per TC).
    try:
        phys_vmem = int(pltpu.get_tpu_info().vmem_capacity_bytes)
    except Exception:
        phys_vmem = 64 * 1024 * 1024
    vmem_limit = min(phys_vmem * 3 // 4, 100 * 1024 * 1024)

    # Single-buffer the resident f32 row when double-buffering it would eat
    # most of the budget (trade: exposes the row DMA once per batch element).
    row_bytes = C * (lp + 4 * PAD) * 4
    x_buffers = 1 if 2 * row_bytes > vmem_limit // 2 else 2
    # TODO(synk): for very large C*lp, switch the input to a windowed
    # (1, C, tl + 4*PAD) block fetched by manual halo DMA (memory_space=pl.ANY)
    # so resident VMEM becomes independent of L.
    # TODO(synk): for small C (< MXU width), pack multiple batch rows into the
    # matmul lane dimension per grid step to fill the MXU.

    # Shard only the batch axis across TensorCores when N >= 2 so each core
    # keeps a single resident row; keep L-tiles parallel only for N == 1.
    dims = ("parallel", "arbitrary") if N >= 2 else ("parallel", "parallel")

    def build(use_pipeline_mode):
        def spec(shape, imap, buffers):
            if use_pipeline_mode:
                return pl.BlockSpec(shape, imap,
                                    pipeline_mode=pl.Buffered(buffer_count=buffers))
            return pl.BlockSpec(shape, imap)

        return pl.pallas_call(
            kernel,
            out_shape=jax.ShapeDtypeStruct((N, C, lp), out_dtype),
            grid_spec=pltpu.PrefetchScalarGridSpec(
                num_scalar_prefetch=0,
                grid=(N, n_l_tiles),
                in_specs=[
                    # whole halo-padded row per n; block index constant over j.
                    spec((1, C, lp + 4 * PAD), lambda n, j: (n, 0, 0), x_buffers),
                    spec((K, C, C), lambda n, j: (0, 0, 0), 1),   # w1 (resident)
                    spec((C, 1), lambda n, j: (0, 0), 1),         # b1 (resident)
                    spec((K, C, C), lambda n, j: (0, 0, 0), 1),   # w2 (resident)
                    spec((C, 1), lambda n, j: (0, 0), 1),         # b2 (resident)
                ],
                out_specs=pl.BlockSpec((1, C, tl), lambda n, j: (n, 0, j)),
            ),
            compiler_params=pltpu.CompilerParams(
                dimension_semantics=dims,
                vmem_limit_bytes=vmem_limit),
            cost_estimate=pl.CostEstimate(flops=flops, transcendentals=0,
                                          bytes_accessed=bytes_accessed),
        )

    try:
        out_pad = build(True)(x_pad, w1s, b1r, w2s, b2r)
    except Exception:
        # Fallback for jax versions without BlockSpec(pipeline_mode=...):
        # identical semantics, default double-buffering.
        out_pad = build(False)(x_pad, w1s, b1r, w2s, b2r)

    return out_pad[:, :, :L]


def _reference(x_ncl, w1, b1, w2, b2):
    """Pure-JAX reference matching PyTorch Conv1d semantics."""
    def conv1d(x, w, b):
        y = jax.lax.conv_general_dilated(
            x, w, window_strides=(1,), padding=((PAD, PAD),),
            dimension_numbers=("NCH", "OIH", "NCH"))
        return y + b[None, :, None]

    h = jnp.maximum(x_ncl, 0.0)
    y1 = conv1d(h, w1, b1)
    h2 = jnp.maximum(y1, 0.0)
    y2 = conv1d(h2, w2, b2)
    return x_ncl + 0.3 * y2


if __name__ == "__main__":
    nhid = 4
    N, L = 2, 16

    key = jax.random.PRNGKey(0)
    kx, kw1, kb1, kw2, kb2 = jax.random.split(key, 5)

    x = jax.random.normal(kx, (N, nhid, L), dtype=jnp.float32)
    bound = 1.0 / (nhid * K) ** 0.5
    w1 = jax.random.uniform(kw1, (nhid, nhid, K), minval=-bound, maxval=bound)
    b1 = jax.random.uniform(kb1, (nhid,), minval=-bound, maxval=bound)
    w2 = jax.random.uniform(kw2, (nhid, nhid, K), minval=-bound, maxval=bound)
    b2 = jax.random.uniform(kb2, (nhid,), minval=-bound, maxval=bound)

    ref = jax.block_until_ready(_reference(x, w1, b1, w2, b2))

    # f32-operand path.  Tolerance is 5e-3 because both the in-kernel MXU
    # matmuls and the XLA conv reference may run f32 at default (reduced)
    # matmul precision on TPU; logic errors (halo/mask/repack) would be O(0.1+).
    out_f32 = jax.block_until_ready(
        resblock_forward(x, w1, b1, w2, b2,
                         compute_dtype=jnp.float32, out_dtype=jnp.float32))
    assert out_f32.shape == (N, nhid, L)
    assert jnp.allclose(out_f32, ref, atol=5e-3, rtol=5e-3), "f32 path mismatch"

    # bf16-operand / f32-accumulate path with bf16 output (memory-bound lever).
    out_bf16 = jax.block_until_ready(
        resblock_forward(x, w1, b1, w2, b2,
                         compute_dtype=jnp.bfloat16, out_dtype=jnp.bfloat16))
    assert out_bf16.shape == (N, nhid, L)
    assert jnp.allclose(out_bf16.astype(jnp.float32), ref,
                        atol=5e-2, rtol=5e-2), "bf16 path mismatch"

    print("KERNEL_OK")
</pallas_src>

<mosaic_0001>
module attributes {stable_mosaic.version = 11 : i64} {
  func.func @_resblock_kernel(%arg0: i32, %arg1: i32, %arg2: memref<1x4x520xf32, #tpu.memory_space<vmem>>, %arg3: memref<5x4x4xf32, #tpu.memory_space<vmem>>, %arg4: memref<4x1xf32, #tpu.memory_space<vmem>>, %arg5: memref<5x4x4xf32, #tpu.memory_space<vmem>>, %arg6: memref<4x1xf32, #tpu.memory_space<vmem>>, %arg7: memref<1x4x512xf32, #tpu.memory_space<vmem>>) attributes {dimension_semantics = [#tpu.dimension_semantics<parallel>, #tpu.dimension_semantics<arbitrary>], iteration_bounds = array<i64: 2, 1>, scalar_prefetch = 0 : i64, scratch_operands = 0 : i64, tpu.core_type = #tpu.core_type<tc>, window_params = [{pipeline_mode = #tpu.pipeline_mode<double_buffered>, transform_indices = @transform_0, window_bounds = array<i64: 1, 4, 520>}, {pipeline_mode = #tpu.pipeline_mode<synchronous>, transform_indices = @transform_1, window_bounds = array<i64: 5, 4, 4>}, {pipeline_mode = #tpu.pipeline_mode<synchronous>, transform_indices = @transform_2, window_bounds = array<i64: 4, 1>}, {pipeline_mode = #tpu.pipeline_mode<synchronous>, transform_indices = @transform_3, window_bounds = array<i64: 5, 4, 4>}, {pipeline_mode = #tpu.pipeline_mode<synchronous>, transform_indices = @transform_4, window_bounds = array<i64: 4, 1>}, {transform_indices = @transform_5, window_bounds = array<i64: 1, 4, 512>}]} {
    %c512_i32 = arith.constant 512 : i32
    %0 = arith.muli %arg1, %c512_i32 : i32
    %1 = tpu.assume_multiple %0, 512 : i32
    %c0 = arith.constant 0 : index
    %c0_0 = arith.constant 0 : index
    %2 = arith.index_cast %1 : i32 to index
    %3 = vector.load %arg2[%c0, %c0_0, %2] : memref<1x4x520xf32, #tpu.memory_space<vmem>>, vector<1x4x520xf32>
    %4 = vector.shape_cast %3 : vector<1x4x520xf32> to vector<4x520xf32>
    %cst = arith.constant 0.000000e+00 : f32
    %5 = vector.broadcast %cst : f32 to vector<4x520xf32>
    %6 = arith.maximumf %4, %5 : vector<4x520xf32>
    %cst_1 = arith.constant 0.000000e+00 : f32
    %7 = vector.broadcast %cst_1 : f32 to vector<4x516xf32>
    %c0_2 = arith.constant 0 : index
    %c0_3 = arith.constant 0 : index
    %c0_4 = arith.constant 0 : index
    %8 = vector.load %arg3[%c0_2, %c0_3, %c0_4] : memref<5x4x4xf32, #tpu.memory_space<vmem>>, vector<1x4x4xf32>
    %9 = vector.shape_cast %8 : vector<1x4x4xf32> to vector<4x4xf32>
    %10 = vector.extract_strided_slice %6 {offsets = [0, 0], sizes = [4, 516], strides = [1, 1]} : vector<4x520xf32> to vector<4x516xf32>
    %cst_5 = arith.constant dense<0.000000e+00> : vector<4x516xf32>
    %11 = tpu.matmul %9, %10, %cst_5 {dimension_numbers = #tpu.dot_dimension_numbers<[1], [0], [0], [1], [0, 0, 1, 1], [], []>} : vector<4x4xf32>, vector<4x516xf32>, vector<4x516xf32> -> vector<4x516xf32>
    %12 = arith.addf %7, %11 : vector<4x516xf32>
    %c1 = arith.constant 1 : index
    %c0_6 = arith.constant 0 : index
    %c0_7 = arith.constant 0 : index
    %13 = vector.load %arg3[%c1, %c0_6, %c0_7] : memref<5x4x4xf32, #tpu.memory_space<vmem>>, vector<1x4x4xf32>
    %14 = vector.shape_cast %13 : vector<1x4x4xf32> to vector<4x4xf32>
    %15 = vector.extract_strided_slice %6 {offsets = [0, 1], sizes = [4, 516], strides = [1, 1]} : vector<4x520xf32> to vector<4x516xf32>
    %cst_8 = arith.constant dense<0.000000e+00> : vector<4x516xf32>
    %16 = tpu.matmul %14, %15, %cst_8 {dimension_numbers = #tpu.dot_dimension_numbers<[1], [0], [0], [1], [0, 0, 1, 1], [], []>} : vector<4x4xf32>, vector<4x516xf32>, vector<4x516xf32> -> vector<4x516xf32>
    %17 = arith.addf %12, %16 : vector<4x516xf32>
    %c2 = arith.constant 2 : index
    %c0_9 = arith.constant 0 : index
    %c0_10 = arith.constant 0 : index
    %18 = vector.load %arg3[%c2, %c0_9, %c0_10] : memref<5x4x4xf32, #tpu.memory_space<vmem>>, vector<1x4x4xf32>
    %19 = vector.shape_cast %18 : vector<1x4x4xf32> to vector<4x4xf32>
    %20 = vector.extract_strided_slice %6 {offsets = [0, 2], sizes = [4, 516], strides = [1, 1]} : vector<4x520xf32> to vector<4x516xf32>
    %cst_11 = arith.constant dense<0.000000e+00> : vector<4x516xf32>
    %21 = tpu.matmul %19, %20, %cst_11 {dimension_numbers = #tpu.dot_dimension_numbers<[1], [0], [0], [1], [0, 0, 1, 1], [], []>} : vector<4x4xf32>, vector<4x516xf32>, vector<4x516xf32> -> vector<4x516xf32>
    %22 = arith.addf %17, %21 : vector<4x516xf32>
    %c3 = arith.constant 3 : index
    %c0_12 = arith.constant 0 : index
    %c0_13 = arith.constant 0 : index
    %23 = vector.load %arg3[%c3, %c0_12, %c0_13] : memref<5x4x4xf32, #tpu.memory_space<vmem>>, vector<1x4x4xf32>
    %24 = vector.shape_cast %23 : vector<1x4x4xf32> to vector<4x4xf32>
    %25 = vector.extract_strided_slice %6 {offsets = [0, 3], sizes = [4, 516], strides = [1, 1]} : vector<4x520xf32> to vector<4x516xf32>
    %cst_14 = arith.constant dense<0.000000e+00> : vector<4x516xf32>
    %26 = tpu.matmul %24, %25, %cst_14 {dimension_numbers = #tpu.dot_dimension_numbers<[1], [0], [0], [1], [0, 0, 1, 1], [], []>} : vector<4x4xf32>, vector<4x516xf32>, vector<4x516xf32> -> vector<4x516xf32>
    %27 = arith.addf %22, %26 : vector<4x516xf32>
    %c4 = arith.constant 4 : index
    %c0_15 = arith.constant 0 : index
    %c0_16 = arith.constant 0 : index
    %28 = vector.load %arg3[%c4, %c0_15, %c0_16] : memref<5x4x4xf32, #tpu.memory_space<vmem>>, vector<1x4x4xf32>
    %29 = vector.shape_cast %28 : vector<1x4x4xf32> to vector<4x4xf32>
    %30 = vector.extract_strided_slice %6 {offsets = [0, 4], sizes = [4, 516], strides = [1, 1]} : vector<4x520xf32> to vector<4x516xf32>
    %cst_17 = arith.constant dense<0.000000e+00> : vector<4x516xf32>
    %31 = tpu.matmul %29, %30, %cst_17 {dimension_numbers = #tpu.dot_dimension_numbers<[1], [0], [0], [1], [0, 0, 1, 1], [], []>} : vector<4x4xf32>, vector<4x516xf32>, vector<4x516xf32> -> vector<4x516xf32>
    %32 = arith.addf %27, %31 : vector<4x516xf32>
    %c0_18 = arith.constant 0 : index
    %c0_19 = arith.constant 0 : index
    %33 = vector.load %arg4[%c0_18, %c0_19] : memref<4x1xf32, #tpu.memory_space<vmem>>, vector<4x1xf32>
    %34 = vector.broadcast %33 : vector<4x1xf32> to vector<4x516xf32>
    %35 = arith.addf %32, %34 : vector<4x516xf32>
    %36 = tpu.iota {dimensions = array<i32: 1>} : vector<1x516xi32>
    %c512_i32_20 = arith.constant 512 : i32
    %37 = arith.muli %arg1, %c512_i32_20 : i32
    %c2_i32 = arith.constant 2 : i32
    %38 = arith.subi %37, %c2_i32 : i32
    %39 = vector.broadcast %38 : i32 to vector<1x516xi32>
    %40 = arith.addi %36, %39 : vector<1x516xi32>
    %c0_i32 = arith.constant 0 : i32
    %41 = vector.broadcast %c0_i32 : i32 to vector<1x516xi32>
    %42 = arith.cmpi sge, %40, %41 : vector<1x516xi32>
    %c16_i32 = arith.constant 16 : i32
    %43 = vector.broadcast %c16_i32 : i32 to vector<1x516xi32>
    %44 = arith.cmpi slt, %40, %43 : vector<1x516xi32>
    %45 = arith.andi %42, %44 : vector<1x516xi1>
    %cst_21 = arith.constant 0.000000e+00 : f32
    %46 = vector.broadcast %cst_21 : f32 to vector<4x516xf32>
    %47 = arith.maximumf %35, %46 : vector<4x516xf32>
    %cst_22 = arith.constant 0.000000e+00 : f32
    %48 = vector.shape_cast %45 : vector<1x516xi1> to vector<1x516xi1>
    %49 = vector.broadcast %48 : vector<1x516xi1> to vector<4x516xi1>
    %50 = vector.broadcast %cst_22 : f32 to vector<4x516xf32>
    %51 = arith.select %49, %47, %50 : vector<4x516xi1>, vector<4x516xf32>
    %cst_23 = arith.constant 0.000000e+00 : f32
    %52 = vector.broadcast %cst_23 : f32 to vector<4x512xf32>
    %c0_24 = arith.constant 0 : index
    %c0_25 = arith.constant 0 : index
    %c0_26 = arith.constant 0 : index
    %53 = vector.load %arg5[%c0_24, %c0_25, %c0_26] : memref<5x4x4xf32, #tpu.memory_space<vmem>>, vector<1x4x4xf32>
    %54 = vector.shape_cast %53 : vector<1x4x4xf32> to vector<4x4xf32>
    %55 = vector.extract_strided_slice %51 {offsets = [0, 0], sizes = [4, 512], strides = [1, 1]} : vector<4x516xf32> to vector<4x512xf32>
    %cst_27 = arith.constant dense<0.000000e+00> : vector<4x512xf32>
    %56 = tpu.matmul %54, %55, %cst_27 {dimension_numbers = #tpu.dot_dimension_numbers<[1], [0], [0], [1], [0, 0, 1, 1], [], []>} : vector<4x4xf32>, vector<4x512xf32>, vector<4x512xf32> -> vector<4x512xf32>
    %57 = arith.addf %52, %56 : vector<4x512xf32>
    %c1_28 = arith.constant 1 : index
    %c0_29 = arith.constant 0 : index
    %c0_30 = arith.constant 0 : index
    %58 = vector.load %arg5[%c1_28, %c0_29, %c0_30] : memref<5x4x4xf32, #tpu.memory_space<vmem>>, vector<1x4x4xf32>
    %59 = vector.shape_cast %58 : vector<1x4x4xf32> to vector<4x4xf32>
    %60 = vector.extract_strided_slice %51 {offsets = [0, 1], sizes = [4, 512], strides = [1, 1]} : vector<4x516xf32> to vector<4x512xf32>
    %cst_31 = arith.constant dense<0.000000e+00> : vector<4x512xf32>
    %61 = tpu.matmul %59, %60, %cst_31 {dimension_numbers = #tpu.dot_dimension_numbers<[1], [0], [0], [1], [0, 0, 1, 1], [], []>} : vector<4x4xf32>, vector<4x512xf32>, vector<4x512xf32> -> vector<4x512xf32>
    %62 = arith.addf %57, %61 : vector<4x512xf32>
    %c2_32 = arith.constant 2 : index
    %c0_33 = arith.constant 0 : index
    %c0_34 = arith.constant 0 : index
    %63 = vector.load %arg5[%c2_32, %c0_33, %c0_34] : memref<5x4x4xf32, #tpu.memory_space<vmem>>, vector<1x4x4xf32>
    %64 = vector.shape_cast %63 : vector<1x4x4xf32> to vector<4x4xf32>
    %65 = vector.extract_strided_slice %51 {offsets = [0, 2], sizes = [4, 512], strides = [1, 1]} : vector<4x516xf32> to vector<4x512xf32>
    %cst_35 = arith.constant dense<0.000000e+00> : vector<4x512xf32>
    %66 = tpu.matmul %64, %65, %cst_35 {dimension_numbers = #tpu.dot_dimension_numbers<[1], [0], [0], [1], [0, 0, 1, 1], [], []>} : vector<4x4xf32>, vector<4x512xf32>, vector<4x512xf32> -> vector<4x512xf32>
    %67 = arith.addf %62, %66 : vector<4x512xf32>
    %c3_36 = arith.constant 3 : index
    %c0_37 = arith.constant 0 : index
    %c0_38 = arith.constant 0 : index
    %68 = vector.load %arg5[%c3_36, %c0_37, %c0_38] : memref<5x4x4xf32, #tpu.memory_space<vmem>>, vector<1x4x4xf32>
    %69 = vector.shape_cast %68 : vector<1x4x4xf32> to vector<4x4xf32>
    %70 = vector.extract_strided_slice %51 {offsets = [0, 3], sizes = [4, 512], strides = [1, 1]} : vector<4x516xf32> to vector<4x512xf32>
    %cst_39 = arith.constant dense<0.000000e+00> : vector<4x512xf32>
    %71 = tpu.matmul %69, %70, %cst_39 {dimension_numbers = #tpu.dot_dimension_numbers<[1], [0], [0], [1], [0, 0, 1, 1], [], []>} : vector<4x4xf32>, vector<4x512xf32>, vector<4x512xf32> -> vector<4x512xf32>
    %72 = arith.addf %67, %71 : vector<4x512xf32>
    %c4_40 = arith.constant 4 : index
    %c0_41 = arith.constant 0 : index
    %c0_42 = arith.constant 0 : index
    %73 = vector.load %arg5[%c4_40, %c0_41, %c0_42] : memref<5x4x4xf32, #tpu.memory_space<vmem>>, vector<1x4x4xf32>
    %74 = vector.shape_cast %73 : vector<1x4x4xf32> to vector<4x4xf32>
    %75 = vector.extract_strided_slice %51 {offsets = [0, 4], sizes = [4, 512], strides = [1, 1]} : vector<4x516xf32> to vector<4x512xf32>
    %cst_43 = arith.constant dense<0.000000e+00> : vector<4x512xf32>
    %76 = tpu.matmul %74, %75, %cst_43 {dimension_numbers = #tpu.dot_dimension_numbers<[1], [0], [0], [1], [0, 0, 1, 1], [], []>} : vector<4x4xf32>, vector<4x512xf32>, vector<4x512xf32> -> vector<4x512xf32>
    %77 = arith.addf %72, %76 : vector<4x512xf32>
    %c0_44 = arith.constant 0 : index
    %c0_45 = arith.constant 0 : index
    %78 = vector.load %arg6[%c0_44, %c0_45] : memref<4x1xf32, #tpu.memory_space<vmem>>, vector<4x1xf32>
    %79 = vector.broadcast %78 : vector<4x1xf32> to vector<4x512xf32>
    %80 = arith.addf %77, %79 : vector<4x512xf32>
    %81 = vector.extract_strided_slice %4 {offsets = [0, 4], sizes = [4, 512], strides = [1, 1]} : vector<4x520xf32> to vector<4x512xf32>
    %cst_46 = arith.constant 3.000000e-01 : f32
    %82 = vector.broadcast %cst_46 : f32 to vector<4x512xf32>
    %83 = arith.mulf %82, %80 : vector<4x512xf32>
    %84 = arith.addf %81, %83 : vector<4x512xf32>
    %c0_47 = arith.constant 0 : index
    %c0_48 = arith.constant 0 : index
    %c0_49 = arith.constant 0 : index
    %85 = vector.load %arg7[%c0_47, %c0_48, %c0_49] : memref<1x4x512xf32, #tpu.memory_space<vmem>>, vector<1x4x512xf32>
    %86 = vector.shape_cast %85 : vector<1x4x512xf32> to vector<4x512xf32>
    %87 = vector.shape_cast %84 : vector<4x512xf32> to vector<1x4x512xf32>
    tpu.vector_store %arg7[%c0_47, %c0_48, %c0_49], %87 {strides = array<i32>} : memref<1x4x512xf32, #tpu.memory_space<vmem>>, vector<1x4x512xf32>,
    return
  }
  func.func @transform_0(%arg0: i32, %arg1: i32) -> (i32, i32, i32) {
    %c0_i32 = arith.constant 0 : i32
    %c0_i32_0 = arith.constant 0 : i32
    %c0_i32_1 = arith.constant 0 : i32
    return %arg0, %c0_i32, %c0_i32_0 : i32, i32, i32
  }
  func.func @transform_1(%arg0: i32, %arg1: i32) -> (i32, i32, i32) {
    %c0_i32 = arith.constant 0 : i32
    %c0_i32_0 = arith.constant 0 : i32
    %c0_i32_1 = arith.constant 0 : i32
    %c0_i32_2 = arith.constant 0 : i32
    return %c0_i32, %c0_i32_0, %c0_i32_1 : i32, i32, i32
  }
  func.func @transform_2(%arg0: i32, %arg1: i32) -> (i32, i32) {
    %c0_i32 = arith.constant 0 : i32
    %c0_i32_0 = arith.constant 0 : i32
    %c0_i32_1 = arith.constant 0 : i32
    return %c0_i32, %c0_i32_0 : i32, i32
  }
  func.func @transform_3(%arg0: i32, %arg1: i32) -> (i32, i32, i32) {
    %c0_i32 = arith.constant 0 : i32
    %c0_i32_0 = arith.constant 0 : i32
    %c0_i32_1 = arith.constant 0 : i32
    %c0_i32_2 = arith.constant 0 : i32
    return %c0_i32, %c0_i32_0, %c0_i32_1 : i32, i32, i32
  }
  func.func @transform_4(%arg0: i32, %arg1: i32) -> (i32, i32) {
    %c0_i32 = arith.constant 0 : i32
    %c0_i32_0 = arith.constant 0 : i32
    %c0_i32_1 = arith.constant 0 : i32
    return %c0_i32, %c0_i32_0 : i32, i32
  }
  func.func @transform_5(%arg0: i32, %arg1: i32) -> (i32, i32, i32) {
    %c0_i32 = arith.constant 0 : i32
    %c0_i32_0 = arith.constant 0 : i32
    return %arg0, %c0_i32, %arg1 : i32, i32, i32
  }
}

module attributes {stable_mosaic.version = 11 : i64} {
  func.func @_resblock_kernel(%arg0: i32, %arg1: i32, %arg2: memref<1x4x520xf32, #tpu.memory_space<vmem>>, %arg3: memref<5x4x4xf32, #tpu.memory_space<vmem>>, %arg4: memref<4x1xf32, #tpu.memory_space<vmem>>, %arg5: memref<5x4x4xf32, #tpu.memory_space<vmem>>, %arg6: memref<4x1xf32, #tpu.memory_space<vmem>>, %arg7: memref<1x4x512xf32, #tpu.memory_space<vmem>>) attributes {dimension_semantics = [#tpu.dimension_semantics<parallel>, #tpu.dimension_semantics<arbitrary>], iteration_bounds = array<i64: 2, 1>, scalar_prefetch = 0 : i64, scratch_operands = 0 : i64, tpu.core_type = #tpu.core_type<tc>, window_params = [{transform_indices = @transform_0, window_bounds = array<i64: 1, 4, 520>}, {pipeline_mode = #tpu.pipeline_mode<synchronous>, transform_indices = @transform_1, window_bounds = array<i64: 5, 4, 4>}, {pipeline_mode = #tpu.pipeline_mode<synchronous>, transform_indices = @transform_2, window_bounds = array<i64: 4, 1>}, {pipeline_mode = #tpu.pipeline_mode<synchronous>, transform_indices = @transform_3, window_bounds = array<i64: 5, 4, 4>}, {pipeline_mode = #tpu.pipeline_mode<synchronous>, transform_indices = @transform_4, window_bounds = array<i64: 4, 1>}, {transform_indices = @transform_5, window_bounds = array<i64: 1, 4, 512>}]} {
    %c512_i32 = arith.constant 512 : i32
    %0 = arith.muli %arg1, %c512_i32 : i32
    %1 = tpu.assume_multiple %0, 512 : i32
    %c0 = arith.constant 0 : index
    %c0_0 = arith.constant 0 : index
    %2 = arith.index_cast %1 : i32 to index
    %3 = vector.load %arg2[%c0, %c0_0, %2] : memref<1x4x520xf32, #tpu.memory_space<vmem>>, vector<1x4x520xf32>
    %4 = vector.shape_cast %3 : vector<1x4x520xf32> to vector<4x520xf32>
    %cst = arith.constant 0.000000e+00 : f32
    %5 = vector.broadcast %cst : f32 to vector<4x520xf32>
    %6 = arith.maximumf %4, %5 : vector<4x520xf32>
    %cst_1 = arith.constant 0.000000e+00 : f32
    %7 = vector.broadcast %cst_1 : f32 to vector<4x516xf32>
    %c0_2 = arith.constant 0 : index
    %c0_3 = arith.constant 0 : index
    %c0_4 = arith.constant 0 : index
    %8 = vector.load %arg3[%c0_2, %c0_3, %c0_4] : memref<5x4x4xf32, #tpu.memory_space<vmem>>, vector<1x4x4xf32>
    %9 = vector.shape_cast %8 : vector<1x4x4xf32> to vector<4x4xf32>
    %10 = vector.extract_strided_slice %6 {offsets = [0, 0], sizes = [4, 516], strides = [1, 1]} : vector<4x520xf32> to vector<4x516xf32>
    %cst_5 = arith.constant dense<0.000000e+00> : vector<4x516xf32>
    %11 = tpu.matmul %9, %10, %cst_5 {dimension_numbers = #tpu.dot_dimension_numbers<[1], [0], [0], [1], [0, 0, 1, 1], [], []>} : vector<4x4xf32>, vector<4x516xf32>, vector<4x516xf32> -> vector<4x516xf32>
    %12 = arith.addf %7, %11 : vector<4x516xf32>
    %c1 = arith.constant 1 : index
    %c0_6 = arith.constant 0 : index
    %c0_7 = arith.constant 0 : index
    %13 = vector.load %arg3[%c1, %c0_6, %c0_7] : memref<5x4x4xf32, #tpu.memory_space<vmem>>, vector<1x4x4xf32>
    %14 = vector.shape_cast %13 : vector<1x4x4xf32> to vector<4x4xf32>
    %15 = vector.extract_strided_slice %6 {offsets = [0, 1], sizes = [4, 516], strides = [1, 1]} : vector<4x520xf32> to vector<4x516xf32>
    %cst_8 = arith.constant dense<0.000000e+00> : vector<4x516xf32>
    %16 = tpu.matmul %14, %15, %cst_8 {dimension_numbers = #tpu.dot_dimension_numbers<[1], [0], [0], [1], [0, 0, 1, 1], [], []>} : vector<4x4xf32>, vector<4x516xf32>, vector<4x516xf32> -> vector<4x516xf32>
    %17 = arith.addf %12, %16 : vector<4x516xf32>
    %c2 = arith.constant 2 : index
    %c0_9 = arith.constant 0 : index
    %c0_10 = arith.constant 0 : index
    %18 = vector.load %arg3[%c2, %c0_9, %c0_10] : memref<5x4x4xf32, #tpu.memory_space<vmem>>, vector<1x4x4xf32>
    %19 = vector.shape_cast %18 : vector<1x4x4xf32> to vector<4x4xf32>
    %20 = vector.extract_strided_slice %6 {offsets = [0, 2], sizes = [4, 516], strides = [1, 1]} : vector<4x520xf32> to vector<4x516xf32>
    %cst_11 = arith.constant dense<0.000000e+00> : vector<4x516xf32>
    %21 = tpu.matmul %19, %20, %cst_11 {dimension_numbers = #tpu.dot_dimension_numbers<[1], [0], [0], [1], [0, 0, 1, 1], [], []>} : vector<4x4xf32>, vector<4x516xf32>, vector<4x516xf32> -> vector<4x516xf32>
    %22 = arith.addf %17, %21 : vector<4x516xf32>
    %c3 = arith.constant 3 : index
    %c0_12 = arith.constant 0 : index
    %c0_13 = arith.constant 0 : index
    %23 = vector.load %arg3[%c3, %c0_12, %c0_13] : memref<5x4x4xf32, #tpu.memory_space<vmem>>, vector<1x4x4xf32>
    %24 = vector.shape_cast %23 : vector<1x4x4xf32> to vector<4x4xf32>
    %25 = vector.extract_strided_slice %6 {offsets = [0, 3], sizes = [4, 516], strides = [1, 1]} : vector<4x520xf32> to vector<4x516xf32>
    %cst_14 = arith.constant dense<0.000000e+00> : vector<4x516xf32>
    %26 = tpu.matmul %24, %25, %cst_14 {dimension_numbers = #tpu.dot_dimension_numbers<[1], [0], [0], [1], [0, 0, 1, 1], [], []>} : vector<4x4xf32>, vector<4x516xf32>, vector<4x516xf32> -> vector<4x516xf32>
    %27 = arith.addf %22, %26 : vector<4x516xf32>
    %c4 = arith.constant 4 : index
    %c0_15 = arith.constant 0 : index
    %c0_16 = arith.constant 0 : index
    %28 = vector.load %arg3[%c4, %c0_15, %c0_16] : memref<5x4x4xf32, #tpu.memory_space<vmem>>, vector<1x4x4xf32>
    %29 = vector.shape_cast %28 : vector<1x4x4xf32> to vector<4x4xf32>
    %30 = vector.extract_strided_slice %6 {offsets = [0, 4], sizes = [4, 516], strides = [1, 1]} : vector<4x520xf32> to vector<4x516xf32>
    %cst_17 = arith.constant dense<0.000000e+00> : vector<4x516xf32>
    %31 = tpu.matmul %29, %30, %cst_17 {dimension_numbers = #tpu.dot_dimension_numbers<[1], [0], [0], [1], [0, 0, 1, 1], [], []>} : vector<4x4xf32>, vector<4x516xf32>, vector<4x516xf32> -> vector<4x516xf32>
    %32 = arith.addf %27, %31 : vector<4x516xf32>
    %c0_18 = arith.constant 0 : index
    %c0_19 = arith.constant 0 : index
    %33 = vector.load %arg4[%c0_18, %c0_19] : memref<4x1xf32, #tpu.memory_space<vmem>>, vector<4x1xf32>
    %34 = vector.broadcast %33 : vector<4x1xf32> to vector<4x516xf32>
    %35 = arith.addf %32, %34 : vector<4x516xf32>
    %36 = tpu.iota {dimensions = array<i32: 1>} : vector<1x516xi32>
    %c512_i32_20 = arith.constant 512 : i32
    %37 = arith.muli %arg1, %c512_i32_20 : i32
    %c2_i32 = arith.constant 2 : i32
    %38 = arith.subi %37, %c2_i32 : i32
    %39 = vector.broadcast %38 : i32 to vector<1x516xi32>
    %40 = arith.addi %36, %39 : vector<1x516xi32>
    %c0_i32 = arith.constant 0 : i32
    %41 = vector.broadcast %c0_i32 : i32 to vector<1x516xi32>
    %42 = arith.cmpi sge, %40, %41 : vector<1x516xi32>
    %c16_i32 = arith.constant 16 : i32
    %43 = vector.broadcast %c16_i32 : i32 to vector<1x516xi32>
    %44 = arith.cmpi slt, %40, %43 : vector<1x516xi32>
    %45 = arith.andi %42, %44 : vector<1x516xi1>
    %cst_21 = arith.constant 0.000000e+00 : f32
    %46 = vector.broadcast %cst_21 : f32 to vector<4x516xf32>
    %47 = arith.maximumf %35, %46 : vector<4x516xf32>
    %cst_22 = arith.constant 0.000000e+00 : f32
    %48 = vector.shape_cast %45 : vector<1x516xi1> to vector<1x516xi1>
    %49 = vector.broadcast %48 : vector<1x516xi1> to vector<4x516xi1>
    %50 = vector.broadcast %cst_22 : f32 to vector<4x516xf32>
    %51 = arith.select %49, %47, %50 : vector<4x516xi1>, vector<4x516xf32>
    %cst_23 = arith.constant 0.000000e+00 : f32
    %52 = vector.broadcast %cst_23 : f32 to vector<4x512xf32>
    %c0_24 = arith.constant 0 : index
    %c0_25 = arith.constant 0 : index
    %c0_26 = arith.constant 0 : index
    %53 = vector.load %arg5[%c0_24, %c0_25, %c0_26] : memref<5x4x4xf32, #tpu.memory_space<vmem>>, vector<1x4x4xf32>
    %54 = vector.shape_cast %53 : vector<1x4x4xf32> to vector<4x4xf32>
    %55 = vector.extract_strided_slice %51 {offsets = [0, 0], sizes = [4, 512], strides = [1, 1]} : vector<4x516xf32> to vector<4x512xf32>
    %cst_27 = arith.constant dense<0.000000e+00> : vector<4x512xf32>
    %56 = tpu.matmul %54, %55, %cst_27 {dimension_numbers = #tpu.dot_dimension_numbers<[1], [0], [0], [1], [0, 0, 1, 1], [], []>} : vector<4x4xf32>, vector<4x512xf32>, vector<4x512xf32> -> vector<4x512xf32>
    %57 = arith.addf %52, %56 : vector<4x512xf32>
    %c1_28 = arith.constant 1 : index
    %c0_29 = arith.constant 0 : index
    %c0_30 = arith.constant 0 : index
    %58 = vector.load %arg5[%c1_28, %c0_29, %c0_30] : memref<5x4x4xf32, #tpu.memory_space<vmem>>, vector<1x4x4xf32>
    %59 = vector.shape_cast %58 : vector<1x4x4xf32> to vector<4x4xf32>
    %60 = vector.extract_strided_slice %51 {offsets = [0, 1], sizes = [4, 512], strides = [1, 1]} : vector<4x516xf32> to vector<4x512xf32>
    %cst_31 = arith.constant dense<0.000000e+00> : vector<4x512xf32>
    %61 = tpu.matmul %59, %60, %cst_31 {dimension_numbers = #tpu.dot_dimension_numbers<[1], [0], [0], [1], [0, 0, 1, 1], [], []>} : vector<4x4xf32>, vector<4x512xf32>, vector<4x512xf32> -> vector<4x512xf32>
    %62 = arith.addf %57, %61 : vector<4x512xf32>
    %c2_32 = arith.constant 2 : index
    %c0_33 = arith.constant 0 : index
    %c0_34 = arith.constant 0 : index
    %63 = vector.load %arg5[%c2_32, %c0_33, %c0_34] : memref<5x4x4xf32, #tpu.memory_space<vmem>>, vector<1x4x4xf32>
    %64 = vector.shape_cast %63 : vector<1x4x4xf32> to vector<4x4xf32>
    %65 = vector.extract_strided_slice %51 {offsets = [0, 2], sizes = [4, 512], strides = [1, 1]} : vector<4x516xf32> to vector<4x512xf32>
    %cst_35 = arith.constant dense<0.000000e+00> : vector<4x512xf32>
    %66 = tpu.matmul %64, %65, %cst_35 {dimension_numbers = #tpu.dot_dimension_numbers<[1], [0], [0], [1], [0, 0, 1, 1], [], []>} : vector<4x4xf32>, vector<4x512xf32>, vector<4x512xf32> -> vector<4x512xf32>
    %67 = arith.addf %62, %66 : vector<4x512xf32>
    %c3_36 = arith.constant 3 : index
    %c0_37 = arith.constant 0 : index
    %c0_38 = arith.constant 0 : index
    %68 = vector.load %arg5[%c3_36, %c0_37, %c0_38] : memref<5x4x4xf32, #tpu.memory_space<vmem>>, vector<1x4x4xf32>
    %69 = vector.shape_cast %68 : vector<1x4x4xf32> to vector<4x4xf32>
    %70 = vector.extract_strided_slice %51 {offsets = [0, 3], sizes = [4, 512], strides = [1, 1]} : vector<4x516xf32> to vector<4x512xf32>
    %cst_39 = arith.constant dense<0.000000e+00> : vector<4x512xf32>
    %71 = tpu.matmul %69, %70, %cst_39 {dimension_numbers = #tpu.dot_dimension_numbers<[1], [0], [0], [1], [0, 0, 1, 1], [], []>} : vector<4x4xf32>, vector<4x512xf32>, vector<4x512xf32> -> vector<4x512xf32>
    %72 = arith.addf %67, %71 : vector<4x512xf32>
    %c4_40 = arith.constant 4 : index
    %c0_41 = arith.constant 0 : index
    %c0_42 = arith.constant 0 : index
    %73 = vector.load %arg5[%c4_40, %c0_41, %c0_42] : memref<5x4x4xf32, #tpu.memory_space<vmem>>, vector<1x4x4xf32>
    %74 = vector.shape_cast %73 : vector<1x4x4xf32> to vector<4x4xf32>
    %75 = vector.extract_strided_slice %51 {offsets = [0, 4], sizes = [4, 512], strides = [1, 1]} : vector<4x516xf32> to vector<4x512xf32>
    %cst_43 = arith.constant dense<0.000000e+00> : vector<4x512xf32>
    %76 = tpu.matmul %74, %75, %cst_43 {dimension_numbers = #tpu.dot_dimension_numbers<[1], [0], [0], [1], [0, 0, 1, 1], [], []>} : vector<4x4xf32>, vector<4x512xf32>, vector<4x512xf32> -> vector<4x512xf32>
    %77 = arith.addf %72, %76 : vector<4x512xf32>
    %c0_44 = arith.constant 0 : index
    %c0_45 = arith.constant 0 : index
    %78 = vector.load %arg6[%c0_44, %c0_45] : memref<4x1xf32, #tpu.memory_space<vmem>>, vector<4x1xf32>
    %79 = vector.broadcast %78 : vector<4x1xf32> to vector<4x512xf32>
    %80 = arith.addf %77, %79 : vector<4x512xf32>
    %81 = vector.extract_strided_slice %4 {offsets = [0, 4], sizes = [4, 512], strides = [1, 1]} : vector<4x520xf32> to vector<4x512xf32>
    %cst_46 = arith.constant 3.000000e-01 : f32
    %82 = vector.broadcast %cst_46 : f32 to vector<4x512xf32>
    %83 = arith.mulf %82, %80 : vector<4x512xf32>
    %84 = arith.addf %81, %83 : vector<4x512xf32>
    %c0_47 = arith.constant 0 : index
    %c0_48 = arith.constant 0 : index
    %c0_49 = arith.constant 0 : index
    %85 = vector.load %arg7[%c0_47, %c0_48, %c0_49] : memref<1x4x512xf32, #tpu.memory_space<vmem>>, vector<1x4x512xf32>
    %86 = vector.shape_cast %85 : vector<1x4x512xf32> to vector<4x512xf32>
    %87 = vector.shape_cast %84 : vector<4x512xf32> to vector<1x4x512xf32>
    tpu.vector_store %arg7[%c0_47, %c0_48, %c0_49], %87 {strides = array<i32>} : memref<1x4x512xf32, #tpu.memory_space<vmem>>, vector<1x4x512xf32>,
    return
  }
  func.func @transform_0(%arg0: i32, %arg1: i32) -> (i32, i32, i32) {
    %c0_i32 = arith.constant 0 : i32
    %c0_i32_0 = arith.constant 0 : i32
    %c0_i32_1 = arith.constant 0 : i32
    return %arg0, %c0_i32, %c0_i32_0 : i32, i32, i32
  }
  func.func @transform_1(%arg0: i32, %arg1: i32) -> (i32, i32, i32) {
    %c0_i32 = arith.constant 0 : i32
    %c0_i32_0 = arith.constant 0 : i32
    %c0_i32_1 = arith.constant 0 : i32
    %c0_i32_2 = arith.constant 0 : i32
    return %c0_i32, %c0_i32_0, %c0_i32_1 : i32, i32, i32
  }
  func.func @transform_2(%arg0: i32, %arg1: i32) -> (i32, i32) {
    %c0_i32 = arith.constant 0 : i32
    %c0_i32_0 = arith.constant 0 : i32
    %c0_i32_1 = arith.constant 0 : i32
    return %c0_i32, %c0_i32_0 : i32, i32
  }
  func.func @transform_3(%arg0: i32, %arg1: i32) -> (i32, i32, i32) {
    %c0_i32 = arith.constant 0 : i32
    %c0_i32_0 = arith.constant 0 : i32
    %c0_i32_1 = arith.constant 0 : i32
    %c0_i32_2 = arith.constant 0 : i32
    return %c0_i32, %c0_i32_0, %c0_i32_1 : i32, i32, i32
  }
  func.func @transform_4(%arg0: i32, %arg1: i32) -> (i32, i32) {
    %c0_i32 = arith.constant 0 : i32
    %c0_i32_0 = arith.constant 0 : i32
    %c0_i32_1 = arith.constant 0 : i32
    return %c0_i32, %c0_i32_0 : i32, i32
  }
  func.func @transform_5(%arg0: i32, %arg1: i32) -> (i32, i32, i32) {
    %c0_i32 = arith.constant 0 : i32
    %c0_i32_0 = arith.constant 0 : i32
    return %arg0, %c0_i32, %arg1 : i32, i32, i32
  }
}

</mosaic_0001>

<bundles_post_ra>
// kernel: tpu_custom_call.1
= control target key start
LH: loop header
LB: loop body
LE: loop exit
PB: predicated region body
PF: predicated region fallthrough
CT: control target
= control target key end

     0   :  { %10 = vsyncpa [#allocation3], 0  ;;  %s3241_s0 = inlined_call_operand.vmem [shape: f32[2,4,520], index: 0, kind: input, shape index: {}]   ;;  %s3242_s1 = inlined_call_operand.vmem [shape: f32[5,4,4], index: 1, kind: input, shape index: {}]   ;;  %s3243_s2 = inlined_call_operand.vmem [shape: f32[4,1], index: 2, kind: input, shape index: {}]   ;;  %s3244_s3 = inlined_call_operand.vmem [shape: f32[5,4,4], index: 3, kind: input, shape index: {}]   ;;  %s3245_s4 = inlined_call_operand.vmem [shape: f32[4,1], index: 4, kind: input, shape index: {}]   ;;  %s3246_s5 = inlined_call_operand.hbm [shape: f32[2,4,512], index: 5, kind: output, shape index: {}]  }
   0x1   :  { %12 = vsyncpa [#allocation3 + $0x1], 0  ;;  %s2876_s18 = smov 0   ;;  %s2878_s19 = smov 0  }
   0x2   :  { %s2880_s20 = smov 0   ;;  %s2882_s21 = smov 0  }
   0x3   :  { %s2884_s22 = smov 0   ;;  %s2886_s23 = smov 0  }
   0x4 LB: > { %s2515_s24 = sadd.s32 4294967295, %s2835_s23   ;;  %s2516_s25 = sadd.s32 4294967294, %s2835_s23   ;;  %s2835_s23 = sphi %s2886_s23, %s18_s23   ;;  %s2831_s22 = sphi %s2884_s22, %s3253_s22   ;;  %s2827_s21 = sphi %s2882_s21, %s3252_s21   ;;  %s2823_s20 = sphi %s2880_s20, %s3251_s20   ;;  %s2819_s19 = sphi %s2878_s19, %s3250_s19   ;;  %s2815_s18 = sphi %s2876_s18, %s3249_s18  }
   0x5   : > { %s30_s26 = sadd.s32 1, %s2831_s22  ;;  %s149_s27 = sadd.s32 1, %s2823_s20 }
   0x6   : > { %p32_p0 = scmp.ge.s32.totalorder %s30_s26, 2  ;;  %p159_p1 = scmp.ne.s32.totalorder %s2823_s20, %s2819_s19 }
   0x7   : > { %p160_p2 = scmp.eq.s32.totalorder %s2515_s24, 1  ;;  %p165_p3 = scmp.ne.s32.totalorder %s2819_s19, %s2815_s18 }
   0x8   : > { %s3255_s26 = smov (%p32_p0, %s30_s26), 0  ;;  %p166_p5 = scmp.eq.s32.totalorder %s2516_s25, 1 }
   0x9   : > { %p2916_p4 = por %p160_p2, %p159_p1  ;;  %s144_s29 = ssub.s32 %s2831_s22, %s3255_s26 }
   0xa   : > { %p2519_p6 = scmp.ge.s32.totalorder %s2835_s23, 1  ;;  %p147_p7 = scmp.eq.s32.totalorder %s144_s29, 0 }
   0xb   : > { %p2923_p8 = por %p166_p5, %p165_p3  ;;  %p204_p9 = scmp.lt.s32.totalorder %s2835_s23, 3 }
   0xc   : > { %s2929_s6 = scalar_select %p147_p7, %s2823_s20, %s149_s27  }
   0xd   : > { %p205_p10 = pnand %p2519_p6, %p204_p9 }
   0xe   : > { %p232_p11 = scmp.lt.s32.totalorder (!%p205_p10), %s2827_s21, 1  ;;  %v2837_v3 = vmov (!%p205_p10), 0.0   ;;  %s2838_s12 = smov (!%p205_p10), 127   ;;  %v2842_v9 = vmov (!%p205_p10), 0   ;;  %v1465_v10 = vld [vmem:[%s3243_s2] sm:$0xf] (!%p205_p10) }
   0xf   : > { %208 = sbr.rel (%p205_p10) target bundleno = 1011 (0x3f3), region = 40  ;;  %351 = vmatprep.mubr.f32.mxu0 (!%p205_p10), %v2837_v3  ;;  %422 = vmatprep.mubr.f32.mxu1 (!%p205_p10), %v2837_v3  ;;  %s2839_s13 = smov (!%p205_p10), 126   ;;  %vm267_vm0 = vcmask (!%p205_p10), 1039360   ;;  %vm276_vm1 = vcmask (!%p205_p10), 1043456   ;;  %vm272_vm2 = vcmask (!%p205_p10), 31744   ;;  %vm736_vm3 = vcmask (!%p205_p10), 1031168  }
  0x10   : > { %s2840_s14 = smov (!%p205_p10), 125   ;;  %s2841_s15 = smov (!%p205_p10), 124   ;;  %2716 = vset.pattern.permute.xlu0 (!%p205_p10), %v2842_v9  ;;  %v2522_v21 = vld [vmem:[%s3242_s1 + $0x4] sm:$0xf] (!%p205_p10)  ;;  %vm2843_vm4 = vmmov (!%p205_p10), 0   ;;  %vm983_vm5 = vcmask (!%p205_p10), 1022976  }
  0x11   : > { %v249_v24 = vld [vmem:[%s3242_s1] sm:$0xf] (!%p205_p10)  ;;  %v2539_v33 = vld [vmem:[%s3242_s1 + $0x8] sm:$0xf] (!%p205_p10)  ;;  %v2548_v40 = vld [vmem:[%s3242_s1 + $0xc] sm:$0xf] (!%p205_p10) }
  0x12   : > { %vm1230_vm6 = vcmask (!%p205_p10), 1014784   ;;  %v2557_v47 = vld [vmem:[%s3242_s1 + $0x10] sm:$0xf] (!%p205_p10)  ;;  %s229_s16 = sand.u32 (!%p205_p10), 1, %s2819_s19   ;;  %s2602_s24 = sshll.u32 (!%p205_p10), %s2827_s21, 8 }
  0x13   : > { %s2520_s17 = sshll.u32 (!%p205_p10), %s229_s16, 4 }
  0x14   : > { %s231_s25 = scalar_lea.vmem (!%p205_p10), [#allocation2], %s2520_s17 }
  0x15   : > { %s2443_s27 = sshll.u32 (!%p205_p10), %s231_s25, 4  ;;  %s3194_s27 = int_to_ptr.vmem [resolvable:$true] %s2443_s27 }
  0x16   : > { %s233_s7 = scalar_select %p232_p11, %s2827_s21, 1 }
  0x17   : > { %s2427_s21 = scalar_lea.sflag [#allocation3], %s229_s16 }
  0x18   : > { %s2652_s8 = smul.u32 20, %s233_s7 }
  0x1a   : > { %s236_s11 = scalar_lea.vmem %s3241_s0, %s2652_s8 }
  0x1b   : > { %v2936_v0 = vld [vmem:[%s236_s11 + $0x8] sm:$0xff]  ;;  %v2938_v1 = vld [vmem:[%s236_s11] sm:$0xff]  ;;  %v2940_v2 = vld [vmem:[%s236_s11 + $0x10] sm:$0xf]  ;;  %s2844_s11 = smov 4  }
  0x1c   : > { %v2945_v4 = vmax.f32 %v2936_v0, 0.0  ;;  %v246_v5 = vmax.f32 %v2938_v1, 0.0  ;;  %v2952_v6 = vmax.f32 %v2940_v2, 0.0 }
  0x1e   : > { %261 = vrot.lane.b32.xlu0 %v2945_v4, %s2838_s12  ;;  %257 = vrot.lane.b32.xlu1 %v246_v5, %s2838_s12  ;;  %v256_v7 = vcombine.high %v2945_v4, %v2945_v4  ;;  %v255_v8 = vcombine.high %v246_v5, %v246_v5 }
  0x22   : > { %265 = vrot.lane.b32.xlu0 %v2952_v6, %s2838_s12  ;;  %726 = vrot.lane.b32.xlu1 %v246_v5, %s2839_s13 }
  0x26   : > { %263 = vrot.lane.b32.xlu1 %v256_v7, %s2838_s12  ;;  %259 = vrot.lane.b32.xlu0 %v255_v8, %s2838_s12 }
  0x2a   : > { %728 = vrot.lane.b32.xlu1 %v255_v8, %s2839_s13  ;;  %730 = vrot.lane.b32.xlu0 %v2945_v4, %s2839_s13 }
  0x2e   : > { %734 = vrot.lane.b32.xlu1 %v2952_v6, %s2839_s13  ;;  %732 = vrot.lane.b32.xlu0 %v256_v7, %s2839_s13 }
  0x32   : > { %981 = vrot.lane.b32.xlu1 %v2952_v6, %s2840_s14  ;;  %979 = vrot.lane.b32.xlu0 %v256_v7, %s2840_s14 }
  0x36   : > { %975 = vrot.lane.b32.xlu1 %v255_v8, %s2840_s14  ;;  %977 = vrot.lane.b32.xlu0 %v2945_v4, %s2840_s14 }
  0x3a   : > { %1222 = vrot.lane.b32.xlu1 %v255_v8, %s2841_s15  ;;  %973 = vrot.lane.b32.xlu0 %v246_v5, %s2840_s14 }
  0x3e   : > { %1220 = vrot.lane.b32.xlu1 %v246_v5, %s2841_s15  ;;  %1224 = vrot.lane.b32.xlu0 %v2945_v4, %s2841_s15 }
  0x42   : > { %1226 = vrot.lane.b32.xlu1 %v256_v7, %s2841_s15  ;;  %1468 = vperm.xlu0 %2716, %v1465_v10  }
  0x46   : > { %1228 = vrot.lane.b32.xlu1 %v2952_v6, %s2841_s15  ;;  %2718 = vrot.lane.b32.xlu0 %v2837_v3, %s2838_s12 }
  0x4a   : > { %2723 = vrot.lane.b32.xlu1 %v2837_v3, %s2838_s12 }
  0x4e   : > { %2728 = vrot.lane.b32.xlu1 %v2837_v3, %s2839_s13 }
  0x52   : > { %2743 = vrot.lane.b32.xlu1 %v2837_v3, %s2840_s14 }
  0x90   : > { %v262_v11 = vpop.permute.xlu0 %261  ;;  %v258_v12 = vpop.permute.xlu1 %257 }
  0x94   : > { %v266_v13 = vpop.permute.xlu0 %265  ;;  %v727_v14 = vpop.permute.xlu1 %726 }
  0x98   : > { %v264_v15 = vpop.permute.xlu1 %263  ;;  %v260_v16 = vpop.permute.xlu0 %259 }
  0x99   : > { %v269_v17 = vsel %vm267_vm0, %v260_v16, %v262_v11  ;;  %v271_v18 = vsel %vm267_vm0, %v264_v15, %v266_v13  ;;  %v268_v19 = vsel %vm267_vm0, %v258_v12, %v260_v16  ;;  %v270_v20 = vsel %vm267_vm0, %v262_v11, %v264_v15 }
  0x9a   : > { %2523 = vmatprep.subr.msk.mxu0 %vm276_vm1, %v269_v17  ;;  %2526 = vmatprep.subr.msk.mxu1 %vm276_vm1, %v271_v18  ;;  %v1476_v15 = vlaneseq }
  0x9b   : > { %2524 = vmatpush1.msk.msra.mxu0 %vm276_vm1, %v268_v19  ;;  %2527 = vmatpush1.msk.msra.mxu1 %vm276_vm1, %v270_v20 }
  0x9c   : > { %2528 = vmatmul.mubr.msk.f32.vlgmr.msra.gmra.mrb[0].mxu1 %vm272_vm2, %v2522_v21  ;;  %v729_v22 = vpop.permute.xlu1 %728  ;;  %2525 = vmatmul.mubr.msk.f32.vlgmr.msra.gmra.mrb[0].mxu0 %vm272_vm2, %v2522_v21  ;;  %v731_v23 = vpop.permute.xlu0 %730 }
  0x9d   : > { %2617 = vmatprep.subr.mxu0 %v2837_v3  ;;  %2531 = vmatprep.subr.msk.mxu1 %vm276_vm1, %v255_v8  ;;  %v738_v27 = vsel %vm736_vm3, %v729_v22, %v731_v23  ;;  %v737_v31 = vsel %vm736_vm3, %v727_v14, %v729_v22 }
  0x9e   : > { %2618 = vmatpush3.msk.msra.mxu0 %vm276_vm1, %v266_v13  ;;  %2619 = vmatprep.mubr.msk.f32.mxu0 %vm2843_vm4, %v2837_v3 }
  0x9f   : > { %2532 = vmatpush1.msk.msra.mxu1 %vm276_vm1, %v246_v5  ;;  %576 = vmatprep.mubr.f32.mxu1 %v2837_v3 }
  0xa0   : > { %2534 = vmatprep.subr.msk.mxu0 %vm276_vm1, %v256_v7  ;;  %v735_v25 = vpop.permute.xlu1 %734  ;;  %2620 = vmatmul.mubr.msk.f32.vlgmr.msra.gmra.mrb[2].mxu0 %vm272_vm2, %v2522_v21  ;;  %v733_v26 = vpop.permute.xlu0 %732  ;;  %v1477_v21 = vand.u32 127, %v1476_v15 }
  0xa1   : > { %2535 = vmatpush1.msk.msra.mxu0 %vm276_vm1, %v2945_v4  ;;  %v740_v28 = vsel %vm736_vm3, %v733_v26, %v735_v25  ;;  %2533 = vmatmul.mubr.msk.f32.vlgmr.msra.gmra.mrb[2].mxu1 %vm272_vm2, %v249_v24  ;;  %v739_v32 = vsel %vm736_vm3, %v731_v23, %v733_v26 }
  0xa2   : > { %2622 = vmatprep.subr.mxu1 %v2837_v3  ;;  %2540 = vmatprep.subr.msk.mxu0 %vm276_vm1, %v738_v27 }
  0xa3   : > { %2623 = vmatpush3.msk.msra.mxu1 %vm276_vm1, %v2952_v6  ;;  %647 = vmatprep.mubr.f32.mxu0 %v2837_v3 }
  0xa4   : > { %2543 = vmatprep.subr.msk.mxu1 %vm276_vm1, %v740_v28  ;;  %2624 = vmatprep.mubr.msk.f32.mxu1 %vm2843_vm4, %v2837_v3  ;;  %v982_v29 = vpop.permute.xlu1 %981  ;;  %v980_v30 = vpop.permute.xlu0 %979  ;;  %v2566_v28 = vld [vmem:[%s3244_s3 + $0x4] sm:$0xf] }
  0xa5   : > { %2536 = vmatmul.mubr.msk.f32.vlgmr.msra.gmra.mrb[4].mxu0 %vm272_vm2, %v249_v24  ;;  %2625 = vmatmul.mubr.msk.f32.vlgmr.msra.gmra.mrb[4].mxu1 %vm272_vm2, %v249_v24  ;;  %v987_v37 = vsel %vm983_vm5, %v980_v30, %v982_v29 }
  0xa6   : > { %2541 = vmatpush1.msk.msra.mxu0 %vm276_vm1, %v737_v31  ;;  %2544 = vmatpush1.msk.msra.mxu1 %vm276_vm1, %v739_v32  ;;  %v1524_v32 = vld [vmem:[%s3244_s3] sm:$0xf] }
  0xa7   : > { %818 = vmatprep.mubr.f32.mxu0 %v2837_v3  ;;  %2627 = vmatprep.subr.mxu0 %v2837_v3 }
  0xa8   : > { %v976_v34 = vpop.permute.xlu1 %975  ;;  %v978_v35 = vpop.permute.xlu0 %977  ;;  %889 = vmatprep.mubr.f32.mxu1 %v2837_v3 }
  0xa9   : > { %2542 = vmatmul.mubr.msk.f32.vlgmr.msra.gmra.mrb[6].mxu0 %vm272_vm2, %v2539_v33  ;;  %v985_v36 = vsel %vm983_vm5, %v976_v34, %v978_v35  ;;  %2545 = vmatmul.mubr.msk.f32.vlgmr.msra.gmra.mrb[6].mxu1 %vm272_vm2, %v2539_v33  ;;  %v986_v41 = vsel %vm983_vm5, %v978_v35, %v980_v30  ;;  %v1484_v30 = vadd.s32 4294967294, %v1477_v21 }
  0xaa   : > { %2628 = vmatpush3.msk.msra.mxu0 %vm276_vm1, %v735_v25  ;;  %2549 = vmatprep.subr.msk.mxu1 %vm276_vm1, %v985_v36 }
  0xab   : > { %2552 = vmatprep.subr.msk.mxu0 %vm276_vm1, %v987_v37  ;;  %2629 = vmatprep.mubr.msk.f32.mxu0 %vm2843_vm4, %v2837_v3  ;;  %vm1489_vm7 = vcmp.ge.s32.totalorder %v1484_v30, 0  ;;  %vm1494_vm8 = vcmp.lt.s32.totalorder %v1484_v30, 16 }
  0xac   : > { %v1223_v38 = vpop.permute.xlu1 %1222  ;;  %v974_v39 = vpop.permute.xlu0 %973  ;;  %1065 = vmatprep.mubr.f32.mxu1 %v2837_v3  ;;  %vm1499_vm9 = vmand %vm1489_vm7, %vm1494_vm8 }
  0xad   : > { %2630 = vmatmul.mubr.msk.f32.vlgmr.msra.gmra.mrb[8].mxu0 %vm272_vm2, %v2539_v33  ;;  %v984_v42 = vsel %vm983_vm5, %v974_v39, %v976_v34 }
  0xae   : > { %2553 = vmatpush1.msk.msra.mxu0 %vm276_vm1, %v986_v41  ;;  %2550 = vmatpush1.msk.msra.mxu1 %vm276_vm1, %v984_v42 }
  0xaf   : > { %2551 = vmatmul.mubr.msk.f32.vlgmr.msra.gmra.mrb[8].mxu1 %vm272_vm2, %v2548_v40  ;;  %1136 = vmatprep.mubr.f32.mxu0 %v2837_v3 }
  0xb0   : > { %2632 = vmatprep.subr.mxu1 %v2837_v3  ;;  %v1221_v43 = vpop.permute.xlu1 %1220  ;;  %v1225_v44 = vpop.permute.xlu0 %1224  ;;  %2634 = vmatprep.mubr.msk.f32.mxu1 %vm2843_vm4, %v2837_v3 }
  0xb1   : > { %v1231_v45 = vsel %vm1230_vm6, %v1221_v43, %v1223_v38  ;;  %2554 = vmatmul.mubr.msk.f32.vlgmr.msra.gmra.mrb[10].mxu0 %vm272_vm2, %v2548_v40  ;;  %v1232_v46 = vsel %vm1230_vm6, %v1223_v38, %v1225_v44  ;;  %2633 = vmatpush3.msk.msra.mxu1 %vm276_vm1, %v982_v29 }
  0xb2   : > { %2558 = vmatprep.subr.msk.mxu0 %vm276_vm1, %v1232_v46  ;;  %1312 = vmatprep.mubr.f32.mxu0 %v2837_v3 }
  0xb3   : > { %2559 = vmatpush1.msk.msra.mxu0 %vm276_vm1, %v1231_v45  ;;  %2635 = vmatmul.mubr.msk.f32.vlgmr.msra.gmra.mrb[10].mxu1 %vm272_vm2, %v2548_v40 }
  0xb4   : > { %v1227_v48 = vpop.permute.xlu1 %1226  ;;  %2637 = vmatprep.subr.mxu0 %v2837_v3  ;;  %1383 = vmatprep.mubr.f32.mxu1 %v2837_v3 }
  0xb5   : > { %2560 = vmatmul.mubr.msk.f32.vlgmr.msra.gmra.mrb[12].mxu0 %vm272_vm2, %v2557_v47  ;;  %v1233_v51 = vsel %vm1230_vm6, %v1225_v44, %v1227_v48  ;;  %v2371_v44 = vld [vmem:[%s3245_s4] sm:$0xf] }
  0xb6   : > { %2639 = vmatprep.mubr.msk.f32.mxu0 %vm2843_vm4, %v2837_v3 }
  0xb8   : > { %v1229_v49 = vpop.permute.xlu1 %1228 }
  0xb9   : > { %v1234_v50 = vsel %vm1230_vm6, %v1227_v48, %v1229_v49  ;;  %2638 = vmatpush3.msk.msra.mxu0 %vm276_vm1, %v1229_v49 }
  0xba   : > { %2561 = vmatprep.subr.msk.mxu1 %vm276_vm1, %v1234_v50  ;;  %2640 = vmatmul.mubr.msk.f32.vlgmr.msra.gmra.mrb[14].mxu0 %vm272_vm2, %v2557_v47 }
  0xbb   : > { %2562 = vmatpush1.msk.msra.mxu1 %vm276_vm1, %v1233_v51  ;;  %1692 = vmatprep.mubr.f32.mxu0 %v2837_v3 }
  0xbc   : > { %2563 = vmatmul.mubr.msk.f32.vlgmr.msra.gmra.mrb[12].mxu1 %vm272_vm2, %v2557_v47  ;;  %v2724_v61 = vpop.permute.xlu1 %2723 }
  0xbd   : > { %1621 = vmatprep.mubr.f32.mxu1 %v2837_v3  ;;  %v2726_v4 = vunpack.i.h.bf16 %v2724_v61  ;;  %v2725_v5 = vunpack.i.l.bf16 %v2724_v61 }
  0xbf   : > { %v1545_v8 = vsel %vm267_vm0, %v2725_v5, %v2726_v4 }
  0xc0   : > { %2570 = vmatprep.subr.msk.mxu0 %vm276_vm1, %v1545_v8  ;;  %v2729_v45 = vpop.permute.xlu1 %2728 }
  0xc1   : > { %v1469_v9 = vpop.permute.xlu0 %1468  ;;  %v2731_v47 = vunpack.i.h.bf16 %v2729_v45  ;;  %v2730_v48 = vunpack.i.l.bf16 %v2729_v45 }
  0xc4   : > { %v2744_v46 = vpop.permute.xlu1 %2743 }
  0xc5   : > { %v2719_v16 = vpop.permute.xlu0 %2718 }
  0xc6   : > { %v2721_v18 = vunpack.i.h.bf16 %v2719_v16  ;;  %v2720_v19 = vunpack.i.l.bf16 %v2719_v16 }
  0xc8   : > { %v1543_v23 = vsel %vm267_vm0, %v2720_v19, %v2721_v18  ;;  %v1544_v24 = vsel %vm267_vm0, %v2721_v18, %v2725_v5  ;;  %v2590_v18 = vld [vmem:[%s3244_s3 + $0x10] sm:$0xf] }
  0xc9   : > { %2567 = vmatprep.subr.msk.mxu1 %vm276_vm1, %v1543_v23  ;;  %2571 = vmatpush1.msk.msra.mxu0 %vm276_vm1, %v1544_v24 }
  0xca   : > { %2647 = vmatprep.subr.mxu0 %v2837_v3  ;;  %2572 = vmatmul.mubr.msk.f32.vlgmr.msra.gmra.mrb[16].mxu0 %vm272_vm2, %v2566_v28 }
  0xcb   : > { %2648 = vmatpush3.msra.mxu0 %v2837_v3  ;;  %2649 = vmatprep.mubr.msk.f32.mxu0 %vm2843_vm4, %v2837_v3 }
  0xce   : > { %2650 = vmatmul.mubr.msk.f32.vlgmr.msra.gmra.mrb[18].mxu0 %vm272_vm2, %v1524_v32 }
  0xcf   : > { %2014 = vmatprep.mubr.f32.mxu0 %v2837_v3 }
 0x16f   : > { %v353_v52 = vpop.f32.mrb[0].mxu0  ;;  %v424_v53 = vpop.f32.mrb[0].mxu1 }
 0x170   : > { %v355_v54 = vpop.f32.mrb[1].mxu0  ;;  %v426_v55 = vpop.f32.mrb[1].mxu1 }
 0x171   : > { %v2746_v54 = vunpack.i.h.bf16 %v2744_v46  ;;  %v2745_v55 = vunpack.i.l.bf16 %v2744_v46 }
 0x173   : > { %v495_v56 = vpop.f32.mrb[2].mxu0 }
 0x174   : > { %v578_v57 = vpop.f32.mrb[2].mxu1  ;;  %v2621_v58 = vpop.f32.mrb[3].mxu0 }
 0x175   : > { %v579_v59 = vadd.f32 %v578_v57, %v353_v52  ;;  %v580_v60 = vpop.f32.mrb[3].mxu1  ;;  %v1865_v52 = vsel %vm736_vm3, %v2730_v48, %v2731_v47 }
 0x178   : > { %v649_v62 = vpop.f32.mrb[4].mxu0  ;;  %v720_v63 = vpop.f32.mrb[4].mxu1 }
 0x179   : > { %v651_v6 = vpop.f32.mrb[5].mxu0  ;;  %v2626_v7 = vpop.f32.mrb[5].mxu1  ;;  %v2576_v62 = vld [vmem:[%s3244_s3 + $0x8] sm:$0xf] }
 0x17a   : > { %v2040_v7 = vsel %vm983_vm5, %v2745_v55, %v2746_v54 }
 0x17c   : > { %v820_v10 = vpop.f32.mrb[6].mxu0  ;;  %v891_v11 = vpop.f32.mrb[6].mxu1 }
 0x17d   : > { %v966_v12 = vadd.f32 %v820_v10, %v579_v59  ;;  %v822_v13 = vpop.f32.mrb[7].mxu0  ;;  %v893_v14 = vpop.f32.mrb[7].mxu1  ;;  %v2583_v11 = vld [vmem:[%s3244_s3 + $0xc] sm:$0xf] }
 0x180   : > { %v962_v17 = vpop.f32.mrb[8].mxu0 }
 0x181   : > { %v2631_v20 = vpop.f32.mrb[9].mxu0 }
 0x182   : > { %v1067_v22 = vpop.f32.mrb[8].mxu1 }
 0x183   : > { %v1213_v25 = vadd.f32 %v1067_v22, %v966_v12  ;;  %v1069_v26 = vpop.f32.mrb[9].mxu1 }
 0x184   : > { %v1138_v27 = vpop.f32.mrb[10].mxu0 }
 0x185   : > { %v1140_v29 = vpop.f32.mrb[11].mxu0 }
 0x186   : > { %v1209_v31 = vpop.f32.mrb[10].mxu1 }
 0x187   : > { %v2636_v33 = vpop.f32.mrb[11].mxu1 }
 0x188   : > { %v1314_v34 = vpop.f32.mrb[12].mxu0 }
 0x189   : > { %v1460_v35 = vadd.f32 %v1314_v34, %v1213_v25  ;;  %v1316_v36 = vpop.f32.mrb[13].mxu0 }
 0x18b   : > { %v1471_v37 = vadd.f32 %v1469_v9, %v1460_v35 }
 0x18d   : > { %v1504_v38 = vmax.f32 %v1471_v37, 0.0  ;;  %v1456_v39 = vpop.f32.mrb[14].mxu0 }
 0x18e   : > { %v2641_v40 = vpop.f32.mrb[15].mxu0 }
 0x18f   : > { %v1519_v41 = vsel %vm1499_vm9, %v1504_v38, 0.0  ;;  %v1385_v42 = vpop.f32.mrb[12].mxu1 }
 0x190   : > { %1854 = vrot.lane.b32.xlu1 %v1519_v41, %s2839_s13  ;;  %1532 = vrot.lane.b32.xlu0 %v1519_v41, %s2838_s12  ;;  %v1387_v43 = vpop.f32.mrb[13].mxu1  ;;  %s2757_s12 = scalar_lea.vmem %s3194_s27, 256 }
 0x191   : > { %p2758_p12 = scmp.ne.s32.totalorder %s3194_s27, %s2757_s12 }
 0x193   : > { %p2759_p13 = pnand %p2758_p12, %p2916_p4 }
 0x194   : > { %2748 = vrot.lane.b32.xlu1 %v2837_v3, %s2841_s15  ;;  %2733 = vrot.lane.b32.xlu0 %v2837_v3, %s2839_s13  ;;  %s2845_s13 = smov [#allocation2]  }
 0x195   : > { %p2760_p0 = pneg %p2759_p13 }
 0x198   : > { %2200 = vrot.lane.b32.xlu1 %v1519_v41, %s2841_s15  ;;  %2738 = vrot.lane.b32.xlu0 %v2837_v3, %s2840_s14 }
 0x19c   : > { %2027 = vrot.lane.b32.xlu0 %v1519_v41, %s2840_s14  ;;  %s2761_s14 = sshll.u32 %s2845_s13, 4  ;;  %s2762_s14 = int_to_ptr.vmem [resolvable:$false] %s2761_s14 }
 0x19d   : > { %v1694_v23 = vpop.f32.mrb[16].mxu0  ;;  %s2763_s8 = scalar_lea.vmem %s2762_s14, 512  ;;  %p2764_p1 = scmp.lt.s32.totalorder %s3194_s27, %s2762_s14 }
 0x19e   : > { %v1696_v24 = vpop.f32.mrb[17].mxu0  ;;  %p2765_p2 = scmp.lt.s32.totalorder %s2763_s8, %s2757_s12 }
 0x1a0   : > { %2753 = vrot.lane.b32.xlu0 %v2837_v3, %s2841_s15  ;;  %p2766_p3 = por %p2765_p2, %p2764_p1 }
 0x1a1   : > { %v1847_v25 = vpop.f32.mrb[18].mxu0 }
 0x1a2   : > { %v1848_v26 = vadd.f32 %v1847_v25, %v1694_v23  ;;  %v2651_v27 = vpop.f32.mrb[19].mxu0  ;;  %p2767_p5 = pnand %p2766_p3, %p2760_p0 }
 0x1a4   : > { %2374 = vperm.xlu0 %2716, %v2371_v44  }
 0x202   : > { %v1855_v49 = vpop.permute.xlu1 %1854  ;;  %v1533_v50 = vpop.permute.xlu0 %1532 }
 0x203   : > { %v1542_v51 = vsel %vm267_vm0, %v1533_v50, %v2720_v19  ;;  %v1864_v59 = vsel %vm736_vm3, %v1855_v49, %v2730_v48 }
 0x204   : > { %2568 = vmatpush1.msk.msra.mxu1 %vm276_vm1, %v1542_v51 }
 0x205   : > { %2569 = vmatmul.mubr.msk.f32.vlgmr.msra.gmra.mrb[14].mxu1 %vm272_vm2, %v2566_v28  ;;  %2642 = vmatprep.subr.mxu1 %v2837_v3 }
 0x206   : > { %2643 = vmatpush3.msk.msra.mxu1 %vm276_vm1, %v1519_v41  ;;  %v2734_v53 = vpop.permute.xlu0 %2733  ;;  %2644 = vmatprep.mubr.msk.f32.mxu1 %vm2843_vm4, %v2837_v3  ;;  %v2749_v58 = vpop.permute.xlu1 %2748 }
 0x207   : > { %v2736_v56 = vunpack.i.h.bf16 %v2734_v53  ;;  %v2735_v57 = vunpack.i.l.bf16 %v2734_v53  ;;  %2577 = vmatprep.subr.msk.mxu1 %vm276_vm1, %v1865_v52  ;;  %v2751_v63 = vunpack.i.h.bf16 %v2749_v58  ;;  %v2750_v8 = vunpack.i.l.bf16 %v2749_v58 }
 0x209   : > { %2645 = vmatmul.mubr.msk.f32.vlgmr.msra.gmra.mrb[16].mxu1 %vm272_vm2, %v1524_v32  ;;  %v1867_v60 = vsel %vm736_vm3, %v2735_v57, %v2736_v56  ;;  %v1866_v61 = vsel %vm736_vm3, %v2731_v47, %v2735_v57  ;;  %v2211_v14 = vsel %vm1230_vm6, %v2750_v8, %v2751_v63 }
 0x20a   : > { %2578 = vmatpush1.msk.msra.mxu1 %vm276_vm1, %v1864_v59  ;;  %v2739_v4 = vpop.permute.xlu0 %2738  ;;  %2580 = vmatprep.subr.msk.mxu0 %vm276_vm1, %v1867_v60  ;;  %v2201_v12 = vpop.permute.xlu1 %2200 }
 0x20b   : > { %v2741_v5 = vunpack.i.h.bf16 %v2739_v4  ;;  %v2740_v6 = vunpack.i.l.bf16 %v2739_v4  ;;  %2581 = vmatpush1.msk.msra.mxu0 %vm276_vm1, %v1866_v61  ;;  %1943 = vmatprep.mubr.f32.mxu1 %v2837_v3  ;;  %v2210_v16 = vsel %vm1230_vm6, %v2201_v12, %v2750_v8 }
 0x20c   : > { %2582 = vmatmul.mubr.msk.f32.vlgmr.msra.gmra.mrb[20].mxu0 %vm272_vm2, %v2576_v62  ;;  %2587 = vmatprep.subr.msk.mxu0 %vm276_vm1, %v2040_v7 }
 0x20d   : > { %2579 = vmatmul.mubr.msk.f32.vlgmr.msra.gmra.mrb[18].mxu1 %vm272_vm2, %v2576_v62  ;;  %v2038_v9 = vsel %vm983_vm5, %v2740_v6, %v2741_v5  ;;  %v2039_v10 = vsel %vm983_vm5, %v2741_v5, %v2745_v55  ;;  %2187 = vmatprep.mubr.f32.mxu0 %v2837_v3 }
 0x20e   : > { %v2028_v13 = vpop.permute.xlu0 %2027  ;;  %2584 = vmatprep.subr.msk.mxu1 %vm276_vm1, %v2038_v9  ;;  %2588 = vmatpush1.msk.msra.mxu0 %vm276_vm1, %v2039_v10 }
 0x20f   : > { %v2037_v15 = vsel %vm983_vm5, %v2028_v13, %v2740_v6  ;;  %2116 = vmatprep.mubr.f32.mxu1 %v2837_v3 }
 0x210   : > { %2585 = vmatpush1.msk.msra.mxu1 %vm276_vm1, %v2037_v15  ;;  %2589 = vmatmul.mubr.msk.f32.vlgmr.msra.gmra.mrb[22].mxu0 %vm272_vm2, %v2583_v11 }
 0x211   : > { %2586 = vmatmul.mubr.msk.f32.vlgmr.msra.gmra.mrb[20].mxu1 %vm272_vm2, %v2583_v11  ;;  %2591 = vmatprep.subr.msk.mxu1 %vm276_vm1, %v2211_v14 }
 0x212   : > { %v2754_v17 = vpop.permute.xlu0 %2753  ;;  %2592 = vmatpush1.msk.msra.mxu1 %vm276_vm1, %v2210_v16  ;;  %2289 = vmatprep.mubr.f32.mxu1 %v2837_v3 }
 0x213   : > { %v2756_v19 = vunpack.i.h.bf16 %v2754_v17  ;;  %v2755_v20 = vunpack.i.l.bf16 %v2754_v17  ;;  %2360 = vmatprep.mubr.f32.mxu0 %v2837_v3 }
 0x215   : > { %2593 = vmatmul.mubr.msk.f32.vlgmr.msra.gmra.mrb[22].mxu1 %vm272_vm2, %v2590_v18  ;;  %v2213_v21 = vsel %vm1230_vm6, %v2755_v20, %v2756_v19  ;;  %v2212_v22 = vsel %vm1230_vm6, %v2751_v63, %v2755_v20 }
 0x216   : > { %2594 = vmatprep.subr.msk.mxu0 %vm276_vm1, %v2213_v21 }
 0x217   : > { %2595 = vmatpush1.msk.msra.mxu0 %vm276_vm1, %v2212_v22 }
 0x218   : > { %2596 = vmatmul.mubr.msk.f32.vlgmr.msra.gmra.mrb[24].mxu0 %vm272_vm2, %v2590_v18 }
 0x223   : > { %v2375_v51 = vpop.permute.xlu0 %2374 }
 0x2d8   : > { %v1623_v28 = vpop.f32.mrb[14].mxu1 }
 0x2d9   : > { %v1625_v29 = vpop.f32.mrb[15].mxu1 }
 0x2dc   : > { %v1776_v3 = vpop.f32.mrb[16].mxu1 }
 0x2dd   : > { %v1777_v30 = vadd.f32 %v1776_v3, %v1623_v28  ;;  %v2646_v31 = vpop.f32.mrb[17].mxu1 }
 0x2df   : > { %v2016_v32 = vpop.f32.mrb[20].mxu0 }
 0x2e0   : > { %v2023_v33 = vadd.f32 %v2016_v32, %v1848_v26  ;;  %v1945_v34 = vpop.f32.mrb[18].mxu1  ;;  %v2018_v35 = vpop.f32.mrb[21].mxu0 }
 0x2e1   : > { %v2021_v36 = vadd.f32 %v1945_v34, %v1777_v30  ;;  %v2024_v37 = vadd.f32 %v2018_v35, %v1696_v24  ;;  %v1947_v38 = vpop.f32.mrb[19].mxu1 }
 0x2e2   : > { %v2022_v39 = vadd.f32 %v1947_v38, %v1625_v29 }
 0x2e3   : > { %v2189_v40 = vpop.f32.mrb[22].mxu0 }
 0x2e4   : > { %v2196_v41 = vadd.f32 %v2189_v40, %v2023_v33  ;;  %v2118_v42 = vpop.f32.mrb[20].mxu1  ;;  %v2191_v43 = vpop.f32.mrb[23].mxu0 }
 0x2e5   : > { %v2194_v44 = vadd.f32 %v2118_v42, %v2021_v36  ;;  %v2197_v45 = vadd.f32 %v2191_v43, %v2024_v37  ;;  %v2120_v46 = vpop.f32.mrb[21].mxu1 }
 0x2e6   : > { %v2195_v47 = vadd.f32 %v2120_v46, %v2022_v39 }
 0x2e8   : > { %v2291_v48 = vpop.f32.mrb[22].mxu1 }
 0x2e9   : > { %v2367_v49 = vadd.f32 %v2291_v48, %v2194_v44  ;;  %v2293_v50 = vpop.f32.mrb[23].mxu1 }
 0x2ea   : > { %v2368_v52 = vadd.f32 %v2293_v50, %v2195_v47 }
 0x2eb   : > { %v2377_v53 = vadd.f32 %v2375_v51, %v2367_v49  ;;  %v2362_v54 = vpop.f32.mrb[24].mxu0 }
 0x2ec   : > { %v2378_v55 = vadd.f32 %v2375_v51, %v2368_v52  ;;  %v2369_v56 = vadd.f32 %v2362_v54, %v2196_v41  ;;  %v2364_v57 = vpop.f32.mrb[25].mxu0 }
 0x2ed   : > { %v2381_v58 = vmul.f32 0.3, %v2377_v53  ;;  %v2370_v59 = vadd.f32 %v2364_v57, %v2197_v45 }
 0x2ee   : > { %v2382_v60 = vmul.f32 0.3, %v2378_v55  ;;  %v2379_v61 = vadd.f32 %v2375_v51, %v2369_v56 }
 0x2ef   : > { %v2380_v62 = vadd.f32 %v2375_v51, %v2370_v59 }
 0x2f0   : > { %v2383_v63 = vmul.f32 0.3, %v2379_v61  ;;  %v2389_v4 = vcombine.low %v2381_v58, %v2382_v60 }
 0x2f1   : > { %v2384_v5 = vmul.f32 0.3, %v2380_v62 }
 0x2f2   : > { %2391 = vrot.lane.b32.xlu1 %v2389_v4, %s2844_s11 }
 0x2f3   : > { %v2390_v6 = vcombine.low %v2383_v63, %v2384_v5 }
 0x2f5   : > { %2393 = vrot.lane.b32.xlu0 %v2390_v6, %s2844_s11 }
 0x364   : > { %v2392_v7 = vpop.permute.xlu1 %2391 }
 0x365   : > { %v2395_v8 = vrot.slane %v2392_v7, 4 }
 0x367   : > { %v2397_v9 = vsel %vm272_vm2, %v2395_v8, %v2392_v7  ;;  %v2394_v10 = vpop.permute.xlu0 %2393 }
 0x368   : > { %v2403_v11 = vadd.f32 %v2397_v9, %v2938_v1  ;;  %v2396_v12 = vrot.slane %v2394_v10, 4 }
 0x36a   : > { %v2398_v13 = vsel %vm276_vm1, %v2395_v8, %v2396_v12  ;;  %2409 = vrot.lane.b32.xlu1 %v2403_v11, %s2841_s15  ;;  %v2405_v16 = vadd.f32 %v2396_v12, %v2940_v2 }
 0x36b   : > { %v2399_v14 = vsel %vm272_vm2, %v2398_v13, %v2394_v10 }
 0x36c   : > { %v2404_v15 = vadd.f32 %v2399_v14, %v2936_v0 }
 0x36e   : > { %2413 = vrot.lane.b32.xlu1 %v2405_v16, %s2841_s15  ;;  %2411 = vrot.lane.b32.xlu0 %v2404_v15, %s2841_s15  ;;  %s3192_s15 = scalar_lea.hbm %s3246_s5, %s2602_s24 }
 0x3dc   : > { %v2410_v17 = vpop.permute.xlu1 %2409 }
 0x3dd   : > { %v2415_v19 = vrot.slane %v2410_v17, 4 }
 0x3e0   : > { %v2414_v18 = vpop.permute.xlu1 %2413  ;;  %v2412_v1 = vpop.permute.xlu0 %2411 }
 0x3e1   : > { %v2417_v20 = vrot.slane %v2414_v18, 4  ;;  %v2416_v21 = vrot.slane %v2412_v1, 4 }
 0x3e3   : > { %v2418_v0 = vsel %vm276_vm1, %v2415_v19, %v2416_v21  ;;  %v2420_v2 = vsel %vm276_vm1, %v2416_v21, %v2417_v20 }
 0x3e4   : > { %v2421_v22 = vsel %vm1230_vm6, %v2412_v1, %v2420_v2  ;;  %v2419_v23 = vsel %vm1230_vm6, %v2410_v17, %v2418_v0 }
 0x3e5   : > { %2425 = vst [vmem:[%s231_s25 + $0x8] sm:$0xff] %v2421_v22  ;;  %2424 = vst [vmem:[%s231_s25] sm:$0xff] %v2419_v23 }
 0x3e6   : > { %2770 = shalt.err (!%p2767_p5)
}
 0x3e7   : > { %s2771_s9 = scalar_lea.hbm %s3192_s15, 256  ;;  %s2775_s16 = scalar_lea.hbm %s3246_s5, 512 }
 0x3e8   : > { %p2772_p6 = scmp.ne.s32.totalorder %s3192_s15, %s2771_s9  ;;  %p2776_p10 = scmp.lt.u32.totalorder %s3192_s15, %s3246_s5 }
 0x3e9   : > { %p2777_p11 = scmp.lt.u32.totalorder %s2775_s16, %s2771_s9  ;;  %p2779_p13 = scmp.lt.u32.totalorder %s2771_s9, %s3192_s15 }
 0x3ea   : > { %p2773_p7 = pnand %p2772_p6, %p2916_p4 }
 0x3eb   : > { %p2778_p12 = por %p2777_p11, %p2776_p10 }
 0x3ec   : > { %p2774_p9 = pneg %p2773_p7 }
 0x3ed   : > { %p2780_p0 = por %p2779_p13, %p2778_p12 }
 0x3ef   : > { %p2781_p1 = pnand %p2780_p0, %p2774_p9 }
 0x3f1   : > { %2784 = shalt.err (!%p2781_p1)
}
 0x3f2   : > { %2653 = dma.vmem_to_hbm [thread:$0]  (%p2916_p4), %s3194_s27, 256, %s3192_s15, %s2427_s21  }
 0x3f3 PF: > { %p2659_p2 = scmp.ge.s32.totalorder %s2835_s23, 2  ;;  %s2455_s25 = sand.u32 1, %s2815_s18  }
 0x3f4   : > { %s2456_s29 = scalar_lea.sflag [#allocation3], %s2455_s25 }
 0x3f5   : > { %p2656_p3 = pnand %p2659_p2, %p2923_p8 }
 0x3f7   : > { %2810 = dma.done.wait (!%p2656_p3), %s2456_s29, 256  }
 0x3f8   : > { %2812 = vsyncadd (!%p2656_p3), %s2456_s29, 4294967040  ;;  %s18_s23 = sadd.s32 1, %s2835_s23   ;;  %s3249_s18 = smov %s2819_s19 }
 0x3f9   : > { %p15_p5 = scmp.ge.s32.totalorder %s18_s23, 4   ;;  %s3250_s19 = smov %s2823_s20 }
 0x3fa   : > { %s3251_s20 = smov %s2929_s6  ;;  %s3252_s21 = smov %s2831_s22 }
 0x3fb   : > { %s3253_s22 = smov %s3255_s26  ;;  %17 = sbr.rel (!%p15_p5) target bundleno = 4 (0x4), region = 84 }
 0x402   :  { %2461 = vsyncpa [#allocation3], 1 }
 0x403   :  { %2463 = vsyncpa [#allocation3 + $0x1], 1 }

// kernel: tpu_custom_call.1
= control target key start
LH: loop header
LB: loop body
LE: loop exit
PB: predicated region body
PF: predicated region fallthrough
CT: control target
= control target key end

     0   :  { %10 = vsyncpa [#allocation3], 0  ;;  %s3241_s0 = inlined_call_operand.vmem [shape: f32[2,4,520], index: 0, kind: input, shape index: {}]   ;;  %s3242_s1 = inlined_call_operand.vmem [shape: f32[5,4,4], index: 1, kind: input, shape index: {}]   ;;  %s3243_s2 = inlined_call_operand.vmem [shape: f32[4,1], index: 2, kind: input, shape index: {}]   ;;  %s3244_s3 = inlined_call_operand.vmem [shape: f32[5,4,4], index: 3, kind: input, shape index: {}]   ;;  %s3245_s4 = inlined_call_operand.vmem [shape: f32[4,1], index: 4, kind: input, shape index: {}]   ;;  %s3246_s5 = inlined_call_operand.hbm [shape: f32[2,4,512], index: 5, kind: output, shape index: {}]  }
   0x1   :  { %12 = vsyncpa [#allocation3 + $0x1], 0  ;;  %s2876_s18 = smov 0   ;;  %s2878_s19 = smov 0  }
   0x2   :  { %s2880_s20 = smov 0   ;;  %s2882_s21 = smov 0  }
   0x3   :  { %s2884_s22 = smov 0   ;;  %s2886_s23 = smov 0  }
   0x4 LB: > { %s2515_s24 = sadd.s32 4294967295, %s2835_s23   ;;  %s2516_s25 = sadd.s32 4294967294, %s2835_s23   ;;  %s2835_s23 = sphi %s2886_s23, %s18_s23   ;;  %s2831_s22 = sphi %s2884_s22, %s3253_s22   ;;  %s2827_s21 = sphi %s2882_s21, %s3252_s21   ;;  %s2823_s20 = sphi %s2880_s20, %s3251_s20   ;;  %s2819_s19 = sphi %s2878_s19, %s3250_s19   ;;  %s2815_s18 = sphi %s2876_s18, %s3249_s18  }
   0x5   : > { %s30_s26 = sadd.s32 1, %s2831_s22  ;;  %s149_s27 = sadd.s32 1, %s2823_s20 }
   0x6   : > { %p32_p0 = scmp.ge.s32.totalorder %s30_s26, 2  ;;  %p159_p1 = scmp.ne.s32.totalorder %s2823_s20, %s2819_s19 }
   0x7   : > { %p160_p2 = scmp.eq.s32.totalorder %s2515_s24, 1  ;;  %p165_p3 = scmp.ne.s32.totalorder %s2819_s19, %s2815_s18 }
   0x8   : > { %s3255_s26 = smov (%p32_p0, %s30_s26), 0  ;;  %p166_p5 = scmp.eq.s32.totalorder %s2516_s25, 1 }
   0x9   : > { %p2916_p4 = por %p160_p2, %p159_p1  ;;  %s144_s29 = ssub.s32 %s2831_s22, %s3255_s26 }
   0xa   : > { %p2519_p6 = scmp.ge.s32.totalorder %s2835_s23, 1  ;;  %p147_p7 = scmp.eq.s32.totalorder %s144_s29, 0 }
   0xb   : > { %p2923_p8 = por %p166_p5, %p165_p3  ;;  %p204_p9 = scmp.lt.s32.totalorder %s2835_s23, 3 }
   0xc   : > { %s2929_s6 = scalar_select %p147_p7, %s2823_s20, %s149_s27  }
   0xd   : > { %p205_p10 = pnand %p2519_p6, %p204_p9 }
   0xe   : > { %p232_p11 = scmp.lt.s32.totalorder (!%p205_p10), %s2827_s21, 1  ;;  %v2837_v3 = vmov (!%p205_p10), 0.0   ;;  %s2838_s12 = smov (!%p205_p10), 127   ;;  %v2842_v9 = vmov (!%p205_p10), 0   ;;  %v1465_v10 = vld [vmem:[%s3243_s2] sm:$0xf] (!%p205_p10) }
   0xf   : > { %208 = sbr.rel (%p205_p10) target bundleno = 1011 (0x3f3), region = 40  ;;  %351 = vmatprep.mubr.f32.mxu0 (!%p205_p10), %v2837_v3  ;;  %422 = vmatprep.mubr.f32.mxu1 (!%p205_p10), %v2837_v3  ;;  %s2839_s13 = smov (!%p205_p10), 126   ;;  %vm267_vm0 = vcmask (!%p205_p10), 1039360   ;;  %vm276_vm1 = vcmask (!%p205_p10), 1043456   ;;  %vm272_vm2 = vcmask (!%p205_p10), 31744   ;;  %vm736_vm3 = vcmask (!%p205_p10), 1031168  }
  0x10   : > { %s2840_s14 = smov (!%p205_p10), 125   ;;  %s2841_s15 = smov (!%p205_p10), 124   ;;  %2716 = vset.pattern.permute.xlu0 (!%p205_p10), %v2842_v9  ;;  %v2522_v21 = vld [vmem:[%s3242_s1 + $0x4] sm:$0xf] (!%p205_p10)  ;;  %vm2843_vm4 = vmmov (!%p205_p10), 0   ;;  %vm983_vm5 = vcmask (!%p205_p10), 1022976  }
  0x11   : > { %v249_v24 = vld [vmem:[%s3242_s1] sm:$0xf] (!%p205_p10)  ;;  %v2539_v33 = vld [vmem:[%s3242_s1 + $0x8] sm:$0xf] (!%p205_p10)  ;;  %v2548_v40 = vld [vmem:[%s3242_s1 + $0xc] sm:$0xf] (!%p205_p10) }
  0x12   : > { %vm1230_vm6 = vcmask (!%p205_p10), 1014784   ;;  %v2557_v47 = vld [vmem:[%s3242_s1 + $0x10] sm:$0xf] (!%p205_p10)  ;;  %s229_s16 = sand.u32 (!%p205_p10), 1, %s2819_s19   ;;  %s2602_s24 = sshll.u32 (!%p205_p10), %s2827_s21, 8 }
  0x13   : > { %s2520_s17 = sshll.u32 (!%p205_p10), %s229_s16, 4 }
  0x14   : > { %s231_s25 = scalar_lea.vmem (!%p205_p10), [#allocation2], %s2520_s17 }
  0x15   : > { %s2443_s27 = sshll.u32 (!%p205_p10), %s231_s25, 4  ;;  %s3194_s27 = int_to_ptr.vmem [resolvable:$true] %s2443_s27 }
  0x16   : > { %s233_s7 = scalar_select %p232_p11, %s2827_s21, 1 }
  0x17   : > { %s2427_s21 = scalar_lea.sflag [#allocation3], %s229_s16 }
  0x18   : > { %s2652_s8 = smul.u32 20, %s233_s7 }
  0x1a   : > { %s236_s11 = scalar_lea.vmem %s3241_s0, %s2652_s8 }
  0x1b   : > { %v2936_v0 = vld [vmem:[%s236_s11 + $0x8] sm:$0xff]  ;;  %v2938_v1 = vld [vmem:[%s236_s11] sm:$0xff]  ;;  %v2940_v2 = vld [vmem:[%s236_s11 + $0x10] sm:$0xf]  ;;  %s2844_s11 = smov 4  }
  0x1c   : > { %v2945_v4 = vmax.f32 %v2936_v0, 0.0  ;;  %v246_v5 = vmax.f32 %v2938_v1, 0.0  ;;  %v2952_v6 = vmax.f32 %v2940_v2, 0.0 }
  0x1e   : > { %261 = vrot.lane.b32.xlu0 %v2945_v4, %s2838_s12  ;;  %257 = vrot.lane.b32.xlu1 %v246_v5, %s2838_s12  ;;  %v256_v7 = vcombine.high %v2945_v4, %v2945_v4  ;;  %v255_v8 = vcombine.high %v246_v5, %v246_v5 }
  0x22   : > { %265 = vrot.lane.b32.xlu0 %v2952_v6, %s2838_s12  ;;  %726 = vrot.lane.b32.xlu1 %v246_v5, %s2839_s13 }
  0x26   : > { %263 = vrot.lane.b32.xlu1 %v256_v7, %s2838_s12  ;;  %259 = vrot.lane.b32.xlu0 %v255_v8, %s2838_s12 }
  0x2a   : > { %728 = vrot.lane.b32.xlu1 %v255_v8, %s2839_s13  ;;  %730 = vrot.lane.b32.xlu0 %v2945_v4, %s2839_s13 }
  0x2e   : > { %734 = vrot.lane.b32.xlu1 %v2952_v6, %s2839_s13  ;;  %732 = vrot.lane.b32.xlu0 %v256_v7, %s2839_s13 }
  0x32   : > { %981 = vrot.lane.b32.xlu1 %v2952_v6, %s2840_s14  ;;  %979 = vrot.lane.b32.xlu0 %v256_v7, %s2840_s14 }
  0x36   : > { %975 = vrot.lane.b32.xlu1 %v255_v8, %s2840_s14  ;;  %977 = vrot.lane.b32.xlu0 %v2945_v4, %s2840_s14 }
  0x3a   : > { %1222 = vrot.lane.b32.xlu1 %v255_v8, %s2841_s15  ;;  %973 = vrot.lane.b32.xlu0 %v246_v5, %s2840_s14 }
  0x3e   : > { %1220 = vrot.lane.b32.xlu1 %v246_v5, %s2841_s15  ;;  %1224 = vrot.lane.b32.xlu0 %v2945_v4, %s2841_s15 }
  0x42   : > { %1226 = vrot.lane.b32.xlu1 %v256_v7, %s2841_s15  ;;  %1468 = vperm.xlu0 %2716, %v1465_v10  }
  0x46   : > { %1228 = vrot.lane.b32.xlu1 %v2952_v6, %s2841_s15  ;;  %2718 = vrot.lane.b32.xlu0 %v2837_v3, %s2838_s12 }
  0x4a   : > { %2723 = vrot.lane.b32.xlu1 %v2837_v3, %s2838_s12 }
  0x4e   : > { %2728 = vrot.lane.b32.xlu1 %v2837_v3, %s2839_s13 }
  0x52   : > { %2743 = vrot.lane.b32.xlu1 %v2837_v3, %s2840_s14 }
  0x90   : > { %v262_v11 = vpop.permute.xlu0 %261  ;;  %v258_v12 = vpop.permute.xlu1 %257 }
  0x94   : > { %v266_v13 = vpop.permute.xlu0 %265  ;;  %v727_v14 = vpop.permute.xlu1 %726 }
  0x98   : > { %v264_v15 = vpop.permute.xlu1 %263  ;;  %v260_v16 = vpop.permute.xlu0 %259 }
  0x99   : > { %v269_v17 = vsel %vm267_vm0, %v260_v16, %v262_v11  ;;  %v271_v18 = vsel %vm267_vm0, %v264_v15, %v266_v13  ;;  %v268_v19 = vsel %vm267_vm0, %v258_v12, %v260_v16  ;;  %v270_v20 = vsel %vm267_vm0, %v262_v11, %v264_v15 }
  0x9a   : > { %2523 = vmatprep.subr.msk.mxu0 %vm276_vm1, %v269_v17  ;;  %2526 = vmatprep.subr.msk.mxu1 %vm276_vm1, %v271_v18  ;;  %v1476_v15 = vlaneseq }
  0x9b   : > { %2524 = vmatpush1.msk.msra.mxu0 %vm276_vm1, %v268_v19  ;;  %2527 = vmatpush1.msk.msra.mxu1 %vm276_vm1, %v270_v20 }
  0x9c   : > { %2528 = vmatmul.mubr.msk.f32.vlgmr.msra.gmra.mrb[0].mxu1 %vm272_vm2, %v2522_v21  ;;  %v729_v22 = vpop.permute.xlu1 %728  ;;  %2525 = vmatmul.mubr.msk.f32.vlgmr.msra.gmra.mrb[0].mxu0 %vm272_vm2, %v2522_v21  ;;  %v731_v23 = vpop.permute.xlu0 %730 }
  0x9d   : > { %2617 = vmatprep.subr.mxu0 %v2837_v3  ;;  %2531 = vmatprep.subr.msk.mxu1 %vm276_vm1, %v255_v8  ;;  %v738_v27 = vsel %vm736_vm3, %v729_v22, %v731_v23  ;;  %v737_v31 = vsel %vm736_vm3, %v727_v14, %v729_v22 }
  0x9e   : > { %2618 = vmatpush3.msk.msra.mxu0 %vm276_vm1, %v266_v13  ;;  %2619 = vmatprep.mubr.msk.f32.mxu0 %vm2843_vm4, %v2837_v3 }
  0x9f   : > { %2532 = vmatpush1.msk.msra.mxu1 %vm276_vm1, %v246_v5  ;;  %576 = vmatprep.mubr.f32.mxu1 %v2837_v3 }
  0xa0   : > { %2534 = vmatprep.subr.msk.mxu0 %vm276_vm1, %v256_v7  ;;  %v735_v25 = vpop.permute.xlu1 %734  ;;  %2620 = vmatmul.mubr.msk.f32.vlgmr.msra.gmra.mrb[2].mxu0 %vm272_vm2, %v2522_v21  ;;  %v733_v26 = vpop.permute.xlu0 %732  ;;  %v1477_v21 = vand.u32 127, %v1476_v15 }
  0xa1   : > { %2535 = vmatpush1.msk.msra.mxu0 %vm276_vm1, %v2945_v4  ;;  %v740_v28 = vsel %vm736_vm3, %v733_v26, %v735_v25  ;;  %2533 = vmatmul.mubr.msk.f32.vlgmr.msra.gmra.mrb[2].mxu1 %vm272_vm2, %v249_v24  ;;  %v739_v32 = vsel %vm736_vm3, %v731_v23, %v733_v26 }
  0xa2   : > { %2622 = vmatprep.subr.mxu1 %v2837_v3  ;;  %2540 = vmatprep.subr.msk.mxu0 %vm276_vm1, %v738_v27 }
  0xa3   : > { %2623 = vmatpush3.msk.msra.mxu1 %vm276_vm1, %v2952_v6  ;;  %647 = vmatprep.mubr.f32.mxu0 %v2837_v3 }
  0xa4   : > { %2543 = vmatprep.subr.msk.mxu1 %vm276_vm1, %v740_v28  ;;  %2624 = vmatprep.mubr.msk.f32.mxu1 %vm2843_vm4, %v2837_v3  ;;  %v982_v29 = vpop.permute.xlu1 %981  ;;  %v980_v30 = vpop.permute.xlu0 %979  ;;  %v2566_v28 = vld [vmem:[%s3244_s3 + $0x4] sm:$0xf] }
  0xa5   : > { %2536 = vmatmul.mubr.msk.f32.vlgmr.msra.gmra.mrb[4].mxu0 %vm272_vm2, %v249_v24  ;;  %2625 = vmatmul.mubr.msk.f32.vlgmr.msra.gmra.mrb[4].mxu1 %vm272_vm2, %v249_v24  ;;  %v987_v37 = vsel %vm983_vm5, %v980_v30, %v982_v29 }
  0xa6   : > { %2541 = vmatpush1.msk.msra.mxu0 %vm276_vm1, %v737_v31  ;;  %2544 = vmatpush1.msk.msra.mxu1 %vm276_vm1, %v739_v32  ;;  %v1524_v32 = vld [vmem:[%s3244_s3] sm:$0xf] }
  0xa7   : > { %818 = vmatprep.mubr.f32.mxu0 %v2837_v3  ;;  %2627 = vmatprep.subr.mxu0 %v2837_v3 }
  0xa8   : > { %v976_v34 = vpop.permute.xlu1 %975  ;;  %v978_v35 = vpop.permute.xlu0 %977  ;;  %889 = vmatprep.mubr.f32.mxu1 %v2837_v3 }
  0xa9   : > { %2542 = vmatmul.mubr.msk.f32.vlgmr.msra.gmra.mrb[6].mxu0 %vm272_vm2, %v2539_v33  ;;  %v985_v36 = vsel %vm983_vm5, %v976_v34, %v978_v35  ;;  %2545 = vmatmul.mubr.msk.f32.vlgmr.msra.gmra.mrb[6].mxu1 %vm272_vm2, %v2539_v33  ;;  %v986_v41 = vsel %vm983_vm5, %v978_v35, %v980_v30  ;;  %v1484_v30 = vadd.s32 4294967294, %v1477_v21 }
  0xaa   : > { %2628 = vmatpush3.msk.msra.mxu0 %vm276_vm1, %v735_v25  ;;  %2549 = vmatprep.subr.msk.mxu1 %vm276_vm1, %v985_v36 }
  0xab   : > { %2552 = vmatprep.subr.msk.mxu0 %vm276_vm1, %v987_v37  ;;  %2629 = vmatprep.mubr.msk.f32.mxu0 %vm2843_vm4, %v2837_v3  ;;  %vm1489_vm7 = vcmp.ge.s32.totalorder %v1484_v30, 0  ;;  %vm1494_vm8 = vcmp.lt.s32.totalorder %v1484_v30, 16 }
  0xac   : > { %v1223_v38 = vpop.permute.xlu1 %1222  ;;  %v974_v39 = vpop.permute.xlu0 %973  ;;  %1065 = vmatprep.mubr.f32.mxu1 %v2837_v3  ;;  %vm1499_vm9 = vmand %vm1489_vm7, %vm1494_vm8 }
  0xad   : > { %2630 = vmatmul.mubr.msk.f32.vlgmr.msra.gmra.mrb[8].mxu0 %vm272_vm2, %v2539_v33  ;;  %v984_v42 = vsel %vm983_vm5, %v974_v39, %v976_v34 }
  0xae   : > { %2553 = vmatpush1.msk.msra.mxu0 %vm276_vm1, %v986_v41  ;;  %2550 = vmatpush1.msk.msra.mxu1 %vm276_vm1, %v984_v42 }
  0xaf   : > { %2551 = vmatmul.mubr.msk.f32.vlgmr.msra.gmra.mrb[8].mxu1 %vm272_vm2, %v2548_v40  ;;  %1136 = vmatprep.mubr.f32.mxu0 %v2837_v3 }
  0xb0   : > { %2632 = vmatprep.subr.mxu1 %v2837_v3  ;;  %v1221_v43 = vpop.permute.xlu1 %1220  ;;  %v1225_v44 = vpop.permute.xlu0 %1224  ;;  %2634 = vmatprep.mubr.msk.f32.mxu1 %vm2843_vm4, %v2837_v3 }
  0xb1   : > { %v1231_v45 = vsel %vm1230_vm6, %v1221_v43, %v1223_v38  ;;  %2554 = vmatmul.mubr.msk.f32.vlgmr.msra.gmra.mrb[10].mxu0 %vm272_vm2, %v2548_v40  ;;  %v1232_v46 = vsel %vm1230_vm6, %v1223_v38, %v1225_v44  ;;  %2633 = vmatpush3.msk.msra.mxu1 %vm276_vm1, %v982_v29 }
  0xb2   : > { %2558 = vmatprep.subr.msk.mxu0 %vm276_vm1, %v1232_v46  ;;  %1312 = vmatprep.mubr.f32.mxu0 %v2837_v3 }
  0xb3   : > { %2559 = vmatpush1.msk.msra.mxu0 %vm276_vm1, %v1231_v45  ;;  %2635 = vmatmul.mubr.msk.f32.vlgmr.msra.gmra.mrb[10].mxu1 %vm272_vm2, %v2548_v40 }
  0xb4   : > { %v1227_v48 = vpop.permute.xlu1 %1226  ;;  %2637 = vmatprep.subr.mxu0 %v2837_v3  ;;  %1383 = vmatprep.mubr.f32.mxu1 %v2837_v3 }
  0xb5   : > { %2560 = vmatmul.mubr.msk.f32.vlgmr.msra.gmra.mrb[12].mxu0 %vm272_vm2, %v2557_v47  ;;  %v1233_v51 = vsel %vm1230_vm6, %v1225_v44, %v1227_v48  ;;  %v2371_v44 = vld [vmem:[%s3245_s4] sm:$0xf] }
  0xb6   : > { %2639 = vmatprep.mubr.msk.f32.mxu0 %vm2843_vm4, %v2837_v3 }
  0xb8   : > { %v1229_v49 = vpop.permute.xlu1 %1228 }
  0xb9   : > { %v1234_v50 = vsel %vm1230_vm6, %v1227_v48, %v1229_v49  ;;  %2638 = vmatpush3.msk.msra.mxu0 %vm276_vm1, %v1229_v49 }
  0xba   : > { %2561 = vmatprep.subr.msk.mxu1 %vm276_vm1, %v1234_v50  ;;  %2640 = vmatmul.mubr.msk.f32.vlgmr.msra.gmra.mrb[14].mxu0 %vm272_vm2, %v2557_v47 }
  0xbb   : > { %2562 = vmatpush1.msk.msra.mxu1 %vm276_vm1, %v1233_v51  ;;  %1692 = vmatprep.mubr.f32.mxu0 %v2837_v3 }
  0xbc   : > { %2563 = vmatmul.mubr.msk.f32.vlgmr.msra.gmra.mrb[12].mxu1 %vm272_vm2, %v2557_v47  ;;  %v2724_v61 = vpop.permute.xlu1 %2723 }
  0xbd   : > { %1621 = vmatprep.mubr.f32.mxu1 %v2837_v3  ;;  %v2726_v4 = vunpack.i.h.bf16 %v2724_v61  ;;  %v2725_v5 = vunpack.i.l.bf16 %v2724_v61 }
  0xbf   : > { %v1545_v8 = vsel %vm267_vm0, %v2725_v5, %v2726_v4 }
  0xc0   : > { %2570 = vmatprep.subr.msk.mxu0 %vm276_vm1, %v1545_v8  ;;  %v2729_v45 = vpop.permute.xlu1 %2728 }
  0xc1   : > { %v1469_v9 = vpop.permute.xlu0 %1468  ;;  %v2731_v47 = vunpack.i.h.bf16 %v2729_v45  ;;  %v2730_v48 = vunpack.i.l.bf16 %v2729_v45 }
  0xc4   : > { %v2744_v46 = vpop.permute.xlu1 %2743 }
  0xc5   : > { %v2719_v16 = vpop.permute.xlu0 %2718 }
  0xc6   : > { %v2721_v18 = vunpack.i.h.bf16 %v2719_v16  ;;  %v2720_v19 = vunpack.i.l.bf16 %v2719_v16 }
  0xc8   : > { %v1543_v23 = vsel %vm267_vm0, %v2720_v19, %v2721_v18  ;;  %v1544_v24 = vsel %vm267_vm0, %v2721_v18, %v2725_v5  ;;  %v2590_v18 = vld [vmem:[%s3244_s3 + $0x10] sm:$0xf] }
  0xc9   : > { %2567 = vmatprep.subr.msk.mxu1 %vm276_vm1, %v1543_v23  ;;  %2571 = vmatpush1.msk.msra.mxu0 %vm276_vm1, %v1544_v24 }
  0xca   : > { %2647 = vmatprep.subr.mxu0 %v2837_v3  ;;  %2572 = vmatmul.mubr.msk.f32.vlgmr.msra.gmra.mrb[16].mxu0 %vm272_vm2, %v2566_v28 }
  0xcb   : > { %2648 = vmatpush3.msra.mxu0 %v2837_v3  ;;  %2649 = vmatprep.mubr.msk.f32.mxu0 %vm2843_vm4, %v2837_v3 }
  0xce   : > { %2650 = vmatmul.mubr.msk.f32.vlgmr.msra.gmra.mrb[18].mxu0 %vm272_vm2, %v1524_v32 }
  0xcf   : > { %2014 = vmatprep.mubr.f32.mxu0 %v2837_v3 }
 0x16f   : > { %v353_v52 = vpop.f32.mrb[0].mxu0  ;;  %v424_v53 = vpop.f32.mrb[0].mxu1 }
 0x170   : > { %v355_v54 = vpop.f32.mrb[1].mxu0  ;;  %v426_v55 = vpop.f32.mrb[1].mxu1 }
 0x171   : > { %v2746_v54 = vunpack.i.h.bf16 %v2744_v46  ;;  %v2745_v55 = vunpack.i.l.bf16 %v2744_v46 }
 0x173   : > { %v495_v56 = vpop.f32.mrb[2].mxu0 }
 0x174   : > { %v578_v57 = vpop.f32.mrb[2].mxu1  ;;  %v2621_v58 = vpop.f32.mrb[3].mxu0 }
 0x175   : > { %v579_v59 = vadd.f32 %v578_v57, %v353_v52  ;;  %v580_v60 = vpop.f32.mrb[3].mxu1  ;;  %v1865_v52 = vsel %vm736_vm3, %v2730_v48, %v2731_v47 }
 0x178   : > { %v649_v62 = vpop.f32.mrb[4].mxu0  ;;  %v720_v63 = vpop.f32.mrb[4].mxu1 }
 0x179   : > { %v651_v6 = vpop.f32.mrb[5].mxu0  ;;  %v2626_v7 = vpop.f32.mrb[5].mxu1  ;;  %v2576_v62 = vld [vmem:[%s3244_s3 + $0x8] sm:$0xf] }
 0x17a   : > { %v2040_v7 = vsel %vm983_vm5, %v2745_v55, %v2746_v54 }
 0x17c   : > { %v820_v10 = vpop.f32.mrb[6].mxu0  ;;  %v891_v11 = vpop.f32.mrb[6].mxu1 }
 0x17d   : > { %v966_v12 = vadd.f32 %v820_v10, %v579_v59  ;;  %v822_v13 = vpop.f32.mrb[7].mxu0  ;;  %v893_v14 = vpop.f32.mrb[7].mxu1  ;;  %v2583_v11 = vld [vmem:[%s3244_s3 + $0xc] sm:$0xf] }
 0x180   : > { %v962_v17 = vpop.f32.mrb[8].mxu0 }
 0x181   : > { %v2631_v20 = vpop.f32.mrb[9].mxu0 }
 0x182   : > { %v1067_v22 = vpop.f32.mrb[8].mxu1 }
 0x183   : > { %v1213_v25 = vadd.f32 %v1067_v22, %v966_v12  ;;  %v1069_v26 = vpop.f32.mrb[9].mxu1 }
 0x184   : > { %v1138_v27 = vpop.f32.mrb[10].mxu0 }
 0x185   : > { %v1140_v29 = vpop.f32.mrb[11].mxu0 }
 0x186   : > { %v1209_v31 = vpop.f32.mrb[10].mxu1 }
 0x187   : > { %v2636_v33 = vpop.f32.mrb[11].mxu1 }
 0x188   : > { %v1314_v34 = vpop.f32.mrb[12].mxu0 }
 0x189   : > { %v1460_v35 = vadd.f32 %v1314_v34, %v1213_v25  ;;  %v1316_v36 = vpop.f32.mrb[13].mxu0 }
 0x18b   : > { %v1471_v37 = vadd.f32 %v1469_v9, %v1460_v35 }
 0x18d   : > { %v1504_v38 = vmax.f32 %v1471_v37, 0.0  ;;  %v1456_v39 = vpop.f32.mrb[14].mxu0 }
 0x18e   : > { %v2641_v40 = vpop.f32.mrb[15].mxu0 }
 0x18f   : > { %v1519_v41 = vsel %vm1499_vm9, %v1504_v38, 0.0  ;;  %v1385_v42 = vpop.f32.mrb[12].mxu1 }
 0x190   : > { %1854 = vrot.lane.b32.xlu1 %v1519_v41, %s2839_s13  ;;  %1532 = vrot.lane.b32.xlu0 %v1519_v41, %s2838_s12  ;;  %v1387_v43 = vpop.f32.mrb[13].mxu1  ;;  %s2757_s12 = scalar_lea.vmem %s3194_s27, 256 }
 0x191   : > { %p2758_p12 = scmp.ne.s32.totalorder %s3194_s27, %s2757_s12 }
 0x193   : > { %p2759_p13 = pnand %p2758_p12, %p2916_p4 }
 0x194   : > { %2748 = vrot.lane.b32.xlu1 %v2837_v3, %s2841_s15  ;;  %2733 = vrot.lane.b32.xlu0 %v2837_v3, %s2839_s13  ;;  %s2845_s13 = smov [#allocation2]  }
 0x195   : > { %p2760_p0 = pneg %p2759_p13 }
 0x198   : > { %2200 = vrot.lane.b32.xlu1 %v1519_v41, %s2841_s15  ;;  %2738 = vrot.lane.b32.xlu0 %v2837_v3, %s2840_s14 }
 0x19c   : > { %2027 = vrot.lane.b32.xlu0 %v1519_v41, %s2840_s14  ;;  %s2761_s14 = sshll.u32 %s2845_s13, 4  ;;  %s2762_s14 = int_to_ptr.vmem [resolvable:$false] %s2761_s14 }
 0x19d   : > { %v1694_v23 = vpop.f32.mrb[16].mxu0  ;;  %s2763_s8 = scalar_lea.vmem %s2762_s14, 512  ;;  %p2764_p1 = scmp.lt.s32.totalorder %s3194_s27, %s2762_s14 }
 0x19e   : > { %v1696_v24 = vpop.f32.mrb[17].mxu0  ;;  %p2765_p2 = scmp.lt.s32.totalorder %s2763_s8, %s2757_s12 }
 0x1a0   : > { %2753 = vrot.lane.b32.xlu0 %v2837_v3, %s2841_s15  ;;  %p2766_p3 = por %p2765_p2, %p2764_p1 }
 0x1a1   : > { %v1847_v25 = vpop.f32.mrb[18].mxu0 }
 0x1a2   : > { %v1848_v26 = vadd.f32 %v1847_v25, %v1694_v23  ;;  %v2651_v27 = vpop.f32.mrb[19].mxu0  ;;  %p2767_p5 = pnand %p2766_p3, %p2760_p0 }
 0x1a4   : > { %2374 = vperm.xlu0 %2716, %v2371_v44  }
 0x202   : > { %v1855_v49 = vpop.permute.xlu1 %1854  ;;  %v1533_v50 = vpop.permute.xlu0 %1532 }
 0x203   : > { %v1542_v51 = vsel %vm267_vm0, %v1533_v50, %v2720_v19  ;;  %v1864_v59 = vsel %vm736_vm3, %v1855_v49, %v2730_v48 }
 0x204   : > { %2568 = vmatpush1.msk.msra.mxu1 %vm276_vm1, %v1542_v51 }
 0x205   : > { %2569 = vmatmul.mubr.msk.f32.vlgmr.msra.gmra.mrb[14].mxu1 %vm272_vm2, %v2566_v28  ;;  %2642 = vmatprep.subr.mxu1 %v2837_v3 }
 0x206   : > { %2643 = vmatpush3.msk.msra.mxu1 %vm276_vm1, %v1519_v41  ;;  %v2734_v53 = vpop.permute.xlu0 %2733  ;;  %2644 = vmatprep.mubr.msk.f32.mxu1 %vm2843_vm4, %v2837_v3  ;;  %v2749_v58 = vpop.permute.xlu1 %2748 }
 0x207   : > { %v2736_v56 = vunpack.i.h.bf16 %v2734_v53  ;;  %v2735_v57 = vunpack.i.l.bf16 %v2734_v53  ;;  %2577 = vmatprep.subr.msk.mxu1 %vm276_vm1, %v1865_v52  ;;  %v2751_v63 = vunpack.i.h.bf16 %v2749_v58  ;;  %v2750_v8 = vunpack.i.l.bf16 %v2749_v58 }
 0x209   : > { %2645 = vmatmul.mubr.msk.f32.vlgmr.msra.gmra.mrb[16].mxu1 %vm272_vm2, %v1524_v32  ;;  %v1867_v60 = vsel %vm736_vm3, %v2735_v57, %v2736_v56  ;;  %v1866_v61 = vsel %vm736_vm3, %v2731_v47, %v2735_v57  ;;  %v2211_v14 = vsel %vm1230_vm6, %v2750_v8, %v2751_v63 }
 0x20a   : > { %2578 = vmatpush1.msk.msra.mxu1 %vm276_vm1, %v1864_v59  ;;  %v2739_v4 = vpop.permute.xlu0 %2738  ;;  %2580 = vmatprep.subr.msk.mxu0 %vm276_vm1, %v1867_v60  ;;  %v2201_v12 = vpop.permute.xlu1 %2200 }
 0x20b   : > { %v2741_v5 = vunpack.i.h.bf16 %v2739_v4  ;;  %v2740_v6 = vunpack.i.l.bf16 %v2739_v4  ;;  %2581 = vmatpush1.msk.msra.mxu0 %vm276_vm1, %v1866_v61  ;;  %1943 = vmatprep.mubr.f32.mxu1 %v2837_v3  ;;  %v2210_v16 = vsel %vm1230_vm6, %v2201_v12, %v2750_v8 }
 0x20c   : > { %2582 = vmatmul.mubr.msk.f32.vlgmr.msra.gmra.mrb[20].mxu0 %vm272_vm2, %v2576_v62  ;;  %2587 = vmatprep.subr.msk.mxu0 %vm276_vm1, %v2040_v7 }
 0x20d   : > { %2579 = vmatmul.mubr.msk.f32.vlgmr.msra.gmra.mrb[18].mxu1 %vm272_vm2, %v2576_v62  ;;  %v2038_v9 = vsel %vm983_vm5, %v2740_v6, %v2741_v5  ;;  %v2039_v10 = vsel %vm983_vm5, %v2741_v5, %v2745_v55  ;;  %2187 = vmatprep.mubr.f32.mxu0 %v2837_v3 }
 0x20e   : > { %v2028_v13 = vpop.permute.xlu0 %2027  ;;  %2584 = vmatprep.subr.msk.mxu1 %vm276_vm1, %v2038_v9  ;;  %2588 = vmatpush1.msk.msra.mxu0 %vm276_vm1, %v2039_v10 }
 0x20f   : > { %v2037_v15 = vsel %vm983_vm5, %v2028_v13, %v2740_v6  ;;  %2116 = vmatprep.mubr.f32.mxu1 %v2837_v3 }
 0x210   : > { %2585 = vmatpush1.msk.msra.mxu1 %vm276_vm1, %v2037_v15  ;;  %2589 = vmatmul.mubr.msk.f32.vlgmr.msra.gmra.mrb[22].mxu0 %vm272_vm2, %v2583_v11 }
 0x211   : > { %2586 = vmatmul.mubr.msk.f32.vlgmr.msra.gmra.mrb[20].mxu1 %vm272_vm2, %v2583_v11  ;;  %2591 = vmatprep.subr.msk.mxu1 %vm276_vm1, %v2211_v14 }
 0x212   : > { %v2754_v17 = vpop.permute.xlu0 %2753  ;;  %2592 = vmatpush1.msk.msra.mxu1 %vm276_vm1, %v2210_v16  ;;  %2289 = vmatprep.mubr.f32.mxu1 %v2837_v3 }
 0x213   : > { %v2756_v19 = vunpack.i.h.bf16 %v2754_v17  ;;  %v2755_v20 = vunpack.i.l.bf16 %v2754_v17  ;;  %2360 = vmatprep.mubr.f32.mxu0 %v2837_v3 }
 0x215   : > { %2593 = vmatmul.mubr.msk.f32.vlgmr.msra.gmra.mrb[22].mxu1 %vm272_vm2, %v2590_v18  ;;  %v2213_v21 = vsel %vm1230_vm6, %v2755_v20, %v2756_v19  ;;  %v2212_v22 = vsel %vm1230_vm6, %v2751_v63, %v2755_v20 }
 0x216   : > { %2594 = vmatprep.subr.msk.mxu0 %vm276_vm1, %v2213_v21 }
 0x217   : > { %2595 = vmatpush1.msk.msra.mxu0 %vm276_vm1, %v2212_v22 }
 0x218   : > { %2596 = vmatmul.mubr.msk.f32.vlgmr.msra.gmra.mrb[24].mxu0 %vm272_vm2, %v2590_v18 }
 0x223   : > { %v2375_v51 = vpop.permute.xlu0 %2374 }
 0x2d8   : > { %v1623_v28 = vpop.f32.mrb[14].mxu1 }
 0x2d9   : > { %v1625_v29 = vpop.f32.mrb[15].mxu1 }
 0x2dc   : > { %v1776_v3 = vpop.f32.mrb[16].mxu1 }
 0x2dd   : > { %v1777_v30 = vadd.f32 %v1776_v3, %v1623_v28  ;;  %v2646_v31 = vpop.f32.mrb[17].mxu1 }
 0x2df   : > { %v2016_v32 = vpop.f32.mrb[20].mxu0 }
 0x2e0   : > { %v2023_v33 = vadd.f32 %v2016_v32, %v1848_v26  ;;  %v1945_v34 = vpop.f32.mrb[18].mxu1  ;;  %v2018_v35 = vpop.f32.mrb[21].mxu0 }
 0x2e1   : > { %v2021_v36 = vadd.f32 %v1945_v34, %v1777_v30  ;;  %v2024_v37 = vadd.f32 %v2018_v35, %v1696_v24  ;;  %v1947_v38 = vpop.f32.mrb[19].mxu1 }
 0x2e2   : > { %v2022_v39 = vadd.f32 %v1947_v38, %v1625_v29 }
 0x2e3   : > { %v2189_v40 = vpop.f32.mrb[22].mxu0 }
 0x2e4   : > { %v2196_v41 = vadd.f32 %v2189_v40, %v2023_v33  ;;  %v2118_v42 = vpop.f32.mrb[20].mxu1  ;;  %v2191_v43 = vpop.f32.mrb[23].mxu0 }
 0x2e5   : > { %v2194_v44 = vadd.f32 %v2118_v42, %v2021_v36  ;;  %v2197_v45 = vadd.f32 %v2191_v43, %v2024_v37  ;;  %v2120_v46 = vpop.f32.mrb[21].mxu1 }
 0x2e6   : > { %v2195_v47 = vadd.f32 %v2120_v46, %v2022_v39 }
 0x2e8   : > { %v2291_v48 = vpop.f32.mrb[22].mxu1 }
 0x2e9   : > { %v2367_v49 = vadd.f32 %v2291_v48, %v2194_v44  ;;  %v2293_v50 = vpop.f32.mrb[23].mxu1 }
 0x2ea   : > { %v2368_v52 = vadd.f32 %v2293_v50, %v2195_v47 }
 0x2eb   : > { %v2377_v53 = vadd.f32 %v2375_v51, %v2367_v49  ;;  %v2362_v54 = vpop.f32.mrb[24].mxu0 }
 0x2ec   : > { %v2378_v55 = vadd.f32 %v2375_v51, %v2368_v52  ;;  %v2369_v56 = vadd.f32 %v2362_v54, %v2196_v41  ;;  %v2364_v57 = vpop.f32.mrb[25].mxu0 }
 0x2ed   : > { %v2381_v58 = vmul.f32 0.3, %v2377_v53  ;;  %v2370_v59 = vadd.f32 %v2364_v57, %v2197_v45 }
 0x2ee   : > { %v2382_v60 = vmul.f32 0.3, %v2378_v55  ;;  %v2379_v61 = vadd.f32 %v2375_v51, %v2369_v56 }
 0x2ef   : > { %v2380_v62 = vadd.f32 %v2375_v51, %v2370_v59 }
 0x2f0   : > { %v2383_v63 = vmul.f32 0.3, %v2379_v61  ;;  %v2389_v4 = vcombine.low %v2381_v58, %v2382_v60 }
 0x2f1   : > { %v2384_v5 = vmul.f32 0.3, %v2380_v62 }
 0x2f2   : > { %2391 = vrot.lane.b32.xlu1 %v2389_v4, %s2844_s11 }
 0x2f3   : > { %v2390_v6 = vcombine.low %v2383_v63, %v2384_v5 }
 0x2f5   : > { %2393 = vrot.lane.b32.xlu0 %v2390_v6, %s2844_s11 }
 0x364   : > { %v2392_v7 = vpop.permute.xlu1 %2391 }
 0x365   : > { %v2395_v8 = vrot.slane %v2392_v7, 4 }
 0x367   : > { %v2397_v9 = vsel %vm272_vm2, %v2395_v8, %v2392_v7  ;;  %v2394_v10 = vpop.permute.xlu0 %2393 }
 0x368   : > { %v2403_v11 = vadd.f32 %v2397_v9, %v2938_v1  ;;  %v2396_v12 = vrot.slane %v2394_v10, 4 }
 0x36a   : > { %v2398_v13 = vsel %vm276_vm1, %v2395_v8, %v2396_v12  ;;  %2409 = vrot.lane.b32.xlu1 %v2403_v11, %s2841_s15  ;;  %v2405_v16 = vadd.f32 %v2396_v12, %v2940_v2 }
 0x36b   : > { %v2399_v14 = vsel %vm272_vm2, %v2398_v13, %v2394_v10 }
 0x36c   : > { %v2404_v15 = vadd.f32 %v2399_v14, %v2936_v0 }
 0x36e   : > { %2413 = vrot.lane.b32.xlu1 %v2405_v16, %s2841_s15  ;;  %2411 = vrot.lane.b32.xlu0 %v2404_v15, %s2841_s15  ;;  %s3192_s15 = scalar_lea.hbm %s3246_s5, %s2602_s24 }
 0x3dc   : > { %v2410_v17 = vpop.permute.xlu1 %2409 }
 0x3dd   : > { %v2415_v19 = vrot.slane %v2410_v17, 4 }
 0x3e0   : > { %v2414_v18 = vpop.permute.xlu1 %2413  ;;  %v2412_v1 = vpop.permute.xlu0 %2411 }
 0x3e1   : > { %v2417_v20 = vrot.slane %v2414_v18, 4  ;;  %v2416_v21 = vrot.slane %v2412_v1, 4 }
 0x3e3   : > { %v2418_v0 = vsel %vm276_vm1, %v2415_v19, %v2416_v21  ;;  %v2420_v2 = vsel %vm276_vm1, %v2416_v21, %v2417_v20 }
 0x3e4   : > { %v2421_v22 = vsel %vm1230_vm6, %v2412_v1, %v2420_v2  ;;  %v2419_v23 = vsel %vm1230_vm6, %v2410_v17, %v2418_v0 }
 0x3e5   : > { %2425 = vst [vmem:[%s231_s25 + $0x8] sm:$0xff] %v2421_v22  ;;  %2424 = vst [vmem:[%s231_s25] sm:$0xff] %v2419_v23 }
 0x3e6   : > { %2770 = shalt.err (!%p2767_p5)
}
 0x3e7   : > { %s2771_s9 = scalar_lea.hbm %s3192_s15, 256  ;;  %s2775_s16 = scalar_lea.hbm %s3246_s5, 512 }
 0x3e8   : > { %p2772_p6 = scmp.ne.s32.totalorder %s3192_s15, %s2771_s9  ;;  %p2776_p10 = scmp.lt.u32.totalorder %s3192_s15, %s3246_s5 }
 0x3e9   : > { %p2777_p11 = scmp.lt.u32.totalorder %s2775_s16, %s2771_s9  ;;  %p2779_p13 = scmp.lt.u32.totalorder %s2771_s9, %s3192_s15 }
 0x3ea   : > { %p2773_p7 = pnand %p2772_p6, %p2916_p4 }
 0x3eb   : > { %p2778_p12 = por %p2777_p11, %p2776_p10 }
 0x3ec   : > { %p2774_p9 = pneg %p2773_p7 }
 0x3ed   : > { %p2780_p0 = por %p2779_p13, %p2778_p12 }
 0x3ef   : > { %p2781_p1 = pnand %p2780_p0, %p2774_p9 }
 0x3f1   : > { %2784 = shalt.err (!%p2781_p1)
}
 0x3f2   : > { %2653 = dma.vmem_to_hbm [thread:$0]  (%p2916_p4), %s3194_s27, 256, %s3192_s15, %s2427_s21  }
 0x3f3 PF: > { %p2659_p2 = scmp.ge.s32.totalorder %s2835_s23, 2  ;;  %s2455_s25 = sand.u32 1, %s2815_s18  }
 0x3f4   : > { %s2456_s29 = scalar_lea.sflag [#allocation3], %s2455_s25 }
 0x3f5   : > { %p2656_p3 = pnand %p2659_p2, %p2923_p8 }
 0x3f7   : > { %2810 = dma.done.wait (!%p2656_p3), %s2456_s29, 256  }
 0x3f8   : > { %2812 = vsyncadd (!%p2656_p3), %s2456_s29, 4294967040  ;;  %s18_s23 = sadd.s32 1, %s2835_s23   ;;  %s3249_s18 = smov %s2819_s19 }
 0x3f9   : > { %p15_p5 = scmp.ge.s32.totalorder %s18_s23, 4   ;;  %s3250_s19 = smov %s2823_s20 }
 0x3fa   : > { %s3251_s20 = smov %s2929_s6  ;;  %s3252_s21 = smov %s2831_s22 }
 0x3fb   : > { %s3253_s22 = smov %s3255_s26  ;;  %17 = sbr.rel (!%p15_p5) target bundleno = 4 (0x4), region = 84 }
 0x402   :  { %2461 = vsyncpa [#allocation3], 1 }
 0x403   :  { %2463 = vsyncpa [#allocation3 + $0x1], 1 }

</bundles_post_ra>
